<compile_context>
chip_gen: v7x
topology: tpu7x:2x2x1
jax: 0.10.0
libtpu: 0.0.40
codegen_flags: <defaults>
</compile_context>

<pallas_src>
import functools
import math

import jax
import jax.numpy as jnp
import numpy as np
from jax import lax
from jax.experimental import pallas as pl
from jax.experimental.pallas import tpu as pltpu


# ----------------------------- fused kernel: conv + linear + span attention
def _tcn_kernel(x_ref, w3_ref, cb_ref, lw_ref, lb_ref, att_ref, reg_ref,
                *, B, S, kernel_size, dilation):
    # x_ref  : (B, C_in, S + (K-1)*dilation) time-padded input (causal zeros in front)
    # w3_ref : (K, C_out, C_in) conv weights, tap-major
    # cb_ref : (C_out, 1) conv bias ; lw_ref: (1, C_out) ; lb_ref: (1, 1)
    # att_ref: (B, S_j, S_i) normalised span attention
    # reg_ref: (1,) SMEM scalar  reg_len = mean(x_output**2)
    f32 = jnp.float32
    K = kernel_size

    def ht10(v):  # 0.5 * (hardtanh(10*v) + 1) == clip(5*v + 0.5, 0, 1)
        return jnp.clip(v * 5.0 + 0.5, 0.0, 1.0)

    # ---- causal dilated conv + bias + ReLU + linear, per batch (B tiny & static) ----
    # y[o, t] = sum_{k,c} W[o,c,k] * x_pad[c, t + k*dilation]   (chomp folded into the pad)
    xo_rows = []
    for b in range(B):
        acc = None
        for k in range(K):
            xk = x_ref[b, :, k * dilation:k * dilation + S]            # (C_in, S) static slice
            yk = jnp.dot(w3_ref[k], xk, preferred_element_type=f32)    # (C_out, S)
            acc = yk if acc is None else acc + yk
        h = jnp.maximum(acc + cb_ref[...], 0.0)                        # bias + ReLU
        xo_rows.append(jnp.dot(lw_ref[...], h, preferred_element_type=f32)
                       + lb_ref[...])                                  # (1, S)

    b_iota = lax.broadcasted_iota(jnp.int32, (B, S), 0)
    xo = jnp.zeros((B, S), f32)                      # xo[b, i] = x_output[i, b]
    for b in range(B):
        xo = jnp.where(b_iota == b, xo_rows[b], xo)

    # ---- hoisted per-j quantities (lane index = j) ----
    lane = lax.broadcasted_iota(jnp.int32, (B, S), 1)           # i index over lanes
    jsub = lax.broadcasted_iota(jnp.int32, (B, S, S), 1)        # j index of the output
    rows = lax.broadcasted_iota(jnp.int32, (S, S), 0)
    cols = lax.broadcasted_iota(jnp.int32, (S, S), 1)
    shift_down = (cols == rows + 1).astype(f32)                 # column j <- row j-1
    xsd = jnp.dot(xo, shift_down, preferred_element_type=f32)   # xsd[:, j] = xo[:, j-1], 0 at j=0
    sq2_all = ht10(xsd - xo)                                    # square_2[j]
    xatt_all = xo - jnp.min(xo) + 10.0                          # x_att[j]

    # ---- span attention: cumprod over j, fully unrolled, carries stay in vregs ----
    run = jnp.ones((B, S), f32)        # cumprod_{j'<=j} factor, per (b, i)
    den = jnp.zeros((B, S), f32)       # sum_j span_scores[i, j]
    span = jnp.zeros((B, S, S), f32)   # un-normalised span_scores[b, j, i]
    for j in range(S):                 # static j -> static lane slices, no reductions
        sq1 = ht10(xsd[:, j:j + 1] - xo)                                   # square_1[:, j] over i
        g = jnp.where(lane <= j - 2, 1.0 - sq1 * sq2_all[:, j:j + 1], 1.0)  # mask + (1-mask)*span
        run = run * g                                                       # cumprod over j
        numer = run * jnp.where(lane < j, xatt_all[:, j:j + 1], 0.0)        # span_scores[:, j, :]
        den = den + numer
        span = jnp.where(jsub == j, numer[:, None, :], span)

    # kept rows (i < seq_len_data) always have den >= 10; the guard only protects the
    # all-zero i == S-1 row the wrapper slices away.  Exact reciprocal: single op, off
    # the critical path.
    inv = 1.0 / jnp.where(den > 0.0, den, 1.0)
    att_ref[...] = span * inv[:, None, :]
    reg_ref[0] = jnp.mean(xo * xo)


# ----------------------------- parameters (deterministic, PyTorch-style uniform init)
def make_params(key, n_inputs, n_outputs, kernel_size):
    k1, k2, k3, k4 = jax.random.split(key, 4)
    bc = 1.0 / math.sqrt(n_inputs * kernel_size)
    bl = 1.0 / math.sqrt(n_outputs)
    return dict(
        conv_w=jax.random.uniform(k1, (n_outputs, n_inputs, kernel_size), jnp.float32, -bc, bc),
        conv_b=jax.random.uniform(k2, (n_outputs,), jnp.float32, -bc, bc),
        lin_w=jax.random.uniform(k3, (1, n_outputs), jnp.float32, -bl, bl),
        lin_b=jax.random.uniform(k4, (1,), jnp.float32, -bl, bl),
    )


# ----------------------------- wrapper (layout plumbing + pallas_call)
def tcn_forward(x, seq_len_data, params, *, kernel_size, dilation):
    # x: (S, B, C_in) float32; seq_len_data: static Python int
    S, B, C_in = x.shape
    C_out = params["conv_w"].shape[0]
    K = kernel_size
    pad = (K - 1) * dilation

    # layout-only glue: (S, B, C) -> (B, C, S) with the causal zero padding up front
    x_p = jnp.pad(jnp.transpose(x, (1, 2, 0)), ((0, 0), (0, 0), (pad, 0)))
    w3 = jnp.transpose(params["conv_w"], (2, 0, 1))     # (K, C_out, C_in), tap-major
    cb = params["conv_b"].reshape(C_out, 1)
    lw = params["lin_w"].reshape(1, C_out)
    lb = params["lin_b"].reshape(1, 1)

    att, reg = pl.pallas_call(
        functools.partial(_tcn_kernel, B=B, S=S, kernel_size=K, dilation=dilation),
        out_shape=[
            jax.ShapeDtypeStruct((B, S, S), jnp.float32),   # span attention (b, j, i)
            jax.ShapeDtypeStruct((1,), jnp.float32),        # reg_len
        ],
        in_specs=[pl.BlockSpec(memory_space=pltpu.MemorySpace.VMEM)] * 5,
        out_specs=[
            pl.BlockSpec(memory_space=pltpu.MemorySpace.VMEM),
            pl.BlockSpec(memory_space=pltpu.MemorySpace.SMEM),
        ],
    )(x_p, w3, cb, lw, lb)

    if seq_len_data == S:   # matches the PyTorch forward
        seq_len_data = seq_len_data - 1
    ld = int(seq_len_data)

    # kernel layout (B, S_j, S_i) -> PyTorch layout (seq_len_data, S_j, B, 1)
    attention = jnp.transpose(att, (2, 1, 0))[:ld, :, :, None]
    return attention, ld, reg[0]


# ----------------------------- pure-JAX reference (for correctness check only)
def tcn_reference(x, seq_len_data, params, *, kernel_size, dilation):
    S, B, _ = x.shape
    padding = (kernel_size - 1) * dilation
    x_bcl = jnp.transpose(x, (1, 2, 0))                        # (B, C_in, S)
    y = lax.conv_general_dilated(
        x_bcl, params["conv_w"], window_strides=(1,), padding=[(padding, padding)],
        rhs_dilation=(dilation,), dimension_numbers=("NCH", "OIH", "NCH"),
        precision=lax.Precision.HIGHEST)
    y = y + params["conv_b"][None, :, None]
    y = jnp.maximum(y[:, :, :-padding], 0.0)                   # chomp + ReLU
    xc = jnp.transpose(y, (2, 0, 1))                           # (S, B, C_out)
    xo = jnp.einsum("sbc,oc->sbo", xc, params["lin_w"],
                    precision=lax.Precision.HIGHEST) + params["lin_b"]
    xo = xo[:, :, 0]                                           # (S, B)

    ones = jnp.ones((S, S), jnp.float32)
    shifter_down = jnp.tril(ones, -1) - jnp.tril(ones, -2)
    xsd = shifter_down @ xo

    def ht(v):
        return 0.5 * (jnp.clip(v * 10.0, -1.0, 1.0) + 1.0)

    mask = jnp.tril(ones)[:, :, None]
    mask_shift = jnp.tril(ones, 1)[:, :, None]
    x_square1 = xsd[None, :, :] - xo[:, None, :]
    square_1 = ht(x_square1) * (1 - mask_shift)
    square_2 = ht(xsd - xo)[None, :, :]
    span = 1.0 - square_1 * square_2
    span = jnp.cumprod(mask + (1 - mask) * span, axis=1) * (1 - mask)
    x_att = xo - jnp.min(xo) + 10.0
    span_scores = span[:, :, :, None] * x_att[None, :, :, None]
    if seq_len_data == S:
        seq_len_data -= 1
    span_scores = span_scores[:seq_len_data]
    reg_len = jnp.mean(xo ** 2)
    attention = span_scores / jnp.sum(span_scores, axis=1, keepdims=True)
    return attention, seq_len_data, reg_len


if __name__ == "__main__":
    S, B, C_in, C_out = 8, 2, 4, 32
    kernel_size, dilation = 3, 2
    seq_len_data = 8  # treated as a static Python int

    key = jax.random.PRNGKey(0)
    kx, kp = jax.random.split(key)
    x = jax.random.normal(kx, (S, B, C_in), jnp.float32)
    params = make_params(kp, C_in, C_out, kernel_size)

    attention, ld, reg_len = tcn_forward(
        x, seq_len_data, params, kernel_size=kernel_size, dilation=dilation)
    attention = jax.block_until_ready(attention)
    reg_len = jax.block_until_ready(reg_len)

    att_ref, ld_ref, reg_ref_val = tcn_reference(
        x, seq_len_data, params, kernel_size=kernel_size, dilation=dilation)

    assert ld == int(ld_ref)
    assert attention.shape == (ld, S, B, 1)
    np.testing.assert_allclose(np.asarray(attention), np.asarray(att_ref),
                               rtol=2e-3, atol=2e-3)
    np.testing.assert_allclose(float(reg_len), float(reg_ref_val), rtol=2e-3, atol=2e-3)
    print("KERNEL_OK")
</pallas_src>

<mosaic_0001>
module attributes {stable_mosaic.version = 11 : i64} {
  func.func @_tcn_kernel(%arg0: memref<2x4x12xf32, #tpu.memory_space<vmem>>, %arg1: memref<3x32x4xf32, #tpu.memory_space<vmem>>, %arg2: memref<32x1xf32, #tpu.memory_space<vmem>>, %arg3: memref<1x32xf32, #tpu.memory_space<vmem>>, %arg4: memref<1x1xf32, #tpu.memory_space<vmem>>, %arg5: memref<2x8x8xf32, #tpu.memory_space<vmem>>, %arg6: memref<1xf32, #tpu.memory_space<smem>>) attributes {dimension_semantics = [], scalar_prefetch = 0 : i64, scratch_operands = 0 : i64, tpu.core_type = #tpu.core_type<tc>} {
    %c0 = arith.constant 0 : index
    %c0_0 = arith.constant 0 : index
    %c0_1 = arith.constant 0 : index
    %0 = vector.load %arg0[%c0, %c0_0, %c0_1] : memref<2x4x12xf32, #tpu.memory_space<vmem>>, vector<1x4x8xf32>
    %1 = vector.shape_cast %0 : vector<1x4x8xf32> to vector<4x8xf32>
    %c0_2 = arith.constant 0 : index
    %c0_3 = arith.constant 0 : index
    %c0_4 = arith.constant 0 : index
    %2 = vector.load %arg1[%c0_2, %c0_3, %c0_4] : memref<3x32x4xf32, #tpu.memory_space<vmem>>, vector<1x32x4xf32>
    %3 = vector.shape_cast %2 : vector<1x32x4xf32> to vector<32x4xf32>
    %cst = arith.constant dense<0.000000e+00> : vector<32x8xf32>
    %4 = tpu.matmul %3, %1, %cst {dimension_numbers = #tpu.dot_dimension_numbers<[1], [0], [0], [1], [0, 0, 1, 1], [], []>} : vector<32x4xf32>, vector<4x8xf32>, vector<32x8xf32> -> vector<32x8xf32>
    %c0_5 = arith.constant 0 : index
    %c0_6 = arith.constant 0 : index
    %c2 = arith.constant 2 : index
    %5 = vector.load %arg0[%c0_5, %c0_6, %c2] : memref<2x4x12xf32, #tpu.memory_space<vmem>>, vector<1x4x8xf32>
    %6 = vector.shape_cast %5 : vector<1x4x8xf32> to vector<4x8xf32>
    %c1 = arith.constant 1 : index
    %c0_7 = arith.constant 0 : index
    %c0_8 = arith.constant 0 : index
    %7 = vector.load %arg1[%c1, %c0_7, %c0_8] : memref<3x32x4xf32, #tpu.memory_space<vmem>>, vector<1x32x4xf32>
    %8 = vector.shape_cast %7 : vector<1x32x4xf32> to vector<32x4xf32>
    %cst_9 = arith.constant dense<0.000000e+00> : vector<32x8xf32>
    %9 = tpu.matmul %8, %6, %cst_9 {dimension_numbers = #tpu.dot_dimension_numbers<[1], [0], [0], [1], [0, 0, 1, 1], [], []>} : vector<32x4xf32>, vector<4x8xf32>, vector<32x8xf32> -> vector<32x8xf32>
    %10 = arith.addf %4, %9 : vector<32x8xf32>
    %c0_10 = arith.constant 0 : index
    %c0_11 = arith.constant 0 : index
    %c4 = arith.constant 4 : index
    %11 = vector.load %arg0[%c0_10, %c0_11, %c4] : memref<2x4x12xf32, #tpu.memory_space<vmem>>, vector<1x4x8xf32>
    %12 = vector.shape_cast %11 : vector<1x4x8xf32> to vector<4x8xf32>
    %c2_12 = arith.constant 2 : index
    %c0_13 = arith.constant 0 : index
    %c0_14 = arith.constant 0 : index
    %13 = vector.load %arg1[%c2_12, %c0_13, %c0_14] : memref<3x32x4xf32, #tpu.memory_space<vmem>>, vector<1x32x4xf32>
    %14 = vector.shape_cast %13 : vector<1x32x4xf32> to vector<32x4xf32>
    %cst_15 = arith.constant dense<0.000000e+00> : vector<32x8xf32>
    %15 = tpu.matmul %14, %12, %cst_15 {dimension_numbers = #tpu.dot_dimension_numbers<[1], [0], [0], [1], [0, 0, 1, 1], [], []>} : vector<32x4xf32>, vector<4x8xf32>, vector<32x8xf32> -> vector<32x8xf32>
    %16 = arith.addf %10, %15 : vector<32x8xf32>
    %c0_16 = arith.constant 0 : index
    %c0_17 = arith.constant 0 : index
    %17 = vector.load %arg2[%c0_16, %c0_17] : memref<32x1xf32, #tpu.memory_space<vmem>>, vector<32x1xf32>
    %18 = vector.broadcast %17 : vector<32x1xf32> to vector<32x8xf32>
    %19 = arith.addf %16, %18 : vector<32x8xf32>
    %cst_18 = arith.constant 0.000000e+00 : f32
    %20 = vector.broadcast %cst_18 : f32 to vector<32x8xf32>
    %21 = arith.maximumf %19, %20 : vector<32x8xf32>
    %c0_19 = arith.constant 0 : index
    %c0_20 = arith.constant 0 : index
    %22 = vector.load %arg3[%c0_19, %c0_20] : memref<1x32xf32, #tpu.memory_space<vmem>>, vector<1x32xf32>
    %cst_21 = arith.constant dense<0.000000e+00> : vector<1x8xf32>
    %23 = tpu.matmul %22, %21, %cst_21 {dimension_numbers = #tpu.dot_dimension_numbers<[1], [0], [0], [1], [0, 0, 1, 1], [], []>} : vector<1x32xf32>, vector<32x8xf32>, vector<1x8xf32> -> vector<1x8xf32>
    %c0_22 = arith.constant 0 : index
    %c0_23 = arith.constant 0 : index
    %24 = vector.load %arg4[%c0_22, %c0_23] : memref<1x1xf32, #tpu.memory_space<vmem>>, vector<1x1xf32>
    %25 = vector.broadcast %24 : vector<1x1xf32> to vector<1x8xf32>
    %26 = arith.addf %23, %25 : vector<1x8xf32>
    %c1_24 = arith.constant 1 : index
    %c0_25 = arith.constant 0 : index
    %c0_26 = arith.constant 0 : index
    %27 = vector.load %arg0[%c1_24, %c0_25, %c0_26] : memref<2x4x12xf32, #tpu.memory_space<vmem>>, vector<1x4x8xf32>
    %28 = vector.shape_cast %27 : vector<1x4x8xf32> to vector<4x8xf32>
    %c0_27 = arith.constant 0 : index
    %c0_28 = arith.constant 0 : index
    %c0_29 = arith.constant 0 : index
    %29 = vector.load %arg1[%c0_27, %c0_28, %c0_29] : memref<3x32x4xf32, #tpu.memory_space<vmem>>, vector<1x32x4xf32>
    %30 = vector.shape_cast %29 : vector<1x32x4xf32> to vector<32x4xf32>
    %cst_30 = arith.constant dense<0.000000e+00> : vector<32x8xf32>
    %31 = tpu.matmul %30, %28, %cst_30 {dimension_numbers = #tpu.dot_dimension_numbers<[1], [0], [0], [1], [0, 0, 1, 1], [], []>} : vector<32x4xf32>, vector<4x8xf32>, vector<32x8xf32> -> vector<32x8xf32>
    %c1_31 = arith.constant 1 : index
    %c0_32 = arith.constant 0 : index
    %c2_33 = arith.constant 2 : index
    %32 = vector.load %arg0[%c1_31, %c0_32, %c2_33] : memref<2x4x12xf32, #tpu.memory_space<vmem>>, vector<1x4x8xf32>
    %33 = vector.shape_cast %32 : vector<1x4x8xf32> to vector<4x8xf32>
    %c1_34 = arith.constant 1 : index
    %c0_35 = arith.constant 0 : index
    %c0_36 = arith.constant 0 : index
    %34 = vector.load %arg1[%c1_34, %c0_35, %c0_36] : memref<3x32x4xf32, #tpu.memory_space<vmem>>, vector<1x32x4xf32>
    %35 = vector.shape_cast %34 : vector<1x32x4xf32> to vector<32x4xf32>
    %cst_37 = arith.constant dense<0.000000e+00> : vector<32x8xf32>
    %36 = tpu.matmul %35, %33, %cst_37 {dimension_numbers = #tpu.dot_dimension_numbers<[1], [0], [0], [1], [0, 0, 1, 1], [], []>} : vector<32x4xf32>, vector<4x8xf32>, vector<32x8xf32> -> vector<32x8xf32>
    %37 = arith.addf %31, %36 : vector<32x8xf32>
    %c1_38 = arith.constant 1 : index
    %c0_39 = arith.constant 0 : index
    %c4_40 = arith.constant 4 : index
    %38 = vector.load %arg0[%c1_38, %c0_39, %c4_40] : memref<2x4x12xf32, #tpu.memory_space<vmem>>, vector<1x4x8xf32>
    %39 = vector.shape_cast %38 : vector<1x4x8xf32> to vector<4x8xf32>
    %c2_41 = arith.constant 2 : index
    %c0_42 = arith.constant 0 : index
    %c0_43 = arith.constant 0 : index
    %40 = vector.load %arg1[%c2_41, %c0_42, %c0_43] : memref<3x32x4xf32, #tpu.memory_space<vmem>>, vector<1x32x4xf32>
    %41 = vector.shape_cast %40 : vector<1x32x4xf32> to vector<32x4xf32>
    %cst_44 = arith.constant dense<0.000000e+00> : vector<32x8xf32>
    %42 = tpu.matmul %41, %39, %cst_44 {dimension_numbers = #tpu.dot_dimension_numbers<[1], [0], [0], [1], [0, 0, 1, 1], [], []>} : vector<32x4xf32>, vector<4x8xf32>, vector<32x8xf32> -> vector<32x8xf32>
    %43 = arith.addf %37, %42 : vector<32x8xf32>
    %c0_45 = arith.constant 0 : index
    %c0_46 = arith.constant 0 : index
    %44 = vector.load %arg2[%c0_45, %c0_46] : memref<32x1xf32, #tpu.memory_space<vmem>>, vector<32x1xf32>
    %45 = vector.broadcast %44 : vector<32x1xf32> to vector<32x8xf32>
    %46 = arith.addf %43, %45 : vector<32x8xf32>
    %cst_47 = arith.constant 0.000000e+00 : f32
    %47 = vector.broadcast %cst_47 : f32 to vector<32x8xf32>
    %48 = arith.maximumf %46, %47 : vector<32x8xf32>
    %c0_48 = arith.constant 0 : index
    %c0_49 = arith.constant 0 : index
    %49 = vector.load %arg3[%c0_48, %c0_49] : memref<1x32xf32, #tpu.memory_space<vmem>>, vector<1x32xf32>
    %cst_50 = arith.constant dense<0.000000e+00> : vector<1x8xf32>
    %50 = tpu.matmul %49, %48, %cst_50 {dimension_numbers = #tpu.dot_dimension_numbers<[1], [0], [0], [1], [0, 0, 1, 1], [], []>} : vector<1x32xf32>, vector<32x8xf32>, vector<1x8xf32> -> vector<1x8xf32>
    %c0_51 = arith.constant 0 : index
    %c0_52 = arith.constant 0 : index
    %51 = vector.load %arg4[%c0_51, %c0_52] : memref<1x1xf32, #tpu.memory_space<vmem>>, vector<1x1xf32>
    %52 = vector.broadcast %51 : vector<1x1xf32> to vector<1x8xf32>
    %53 = arith.addf %50, %52 : vector<1x8xf32>
    %54 = tpu.iota {dimensions = array<i32: 0>} : vector<2x8xi32>
    %cst_53 = arith.constant 0.000000e+00 : f32
    %55 = vector.broadcast %cst_53 : f32 to vector<2x8xf32>
    %c0_i32 = arith.constant 0 : i32
    %56 = vector.broadcast %c0_i32 : i32 to vector<2x8xi32>
    %57 = arith.cmpi eq, %54, %56 : vector<2x8xi32>
    %58 = vector.shape_cast %26 : vector<1x8xf32> to vector<1x8xf32>
    %59 = vector.broadcast %58 : vector<1x8xf32> to vector<2x8xf32>
    %60 = arith.select %57, %59, %55 : vector<2x8xi1>, vector<2x8xf32>
    %c1_i32 = arith.constant 1 : i32
    %61 = vector.broadcast %c1_i32 : i32 to vector<2x8xi32>
    %62 = arith.cmpi eq, %54, %61 : vector<2x8xi32>
    %63 = vector.shape_cast %53 : vector<1x8xf32> to vector<1x8xf32>
    %64 = vector.broadcast %63 : vector<1x8xf32> to vector<2x8xf32>
    %65 = arith.select %62, %64, %60 : vector<2x8xi1>, vector<2x8xf32>
    %66 = tpu.iota {dimensions = array<i32: 1>} : vector<2x8xi32>
    %67 = tpu.iota {dimensions = array<i32: 1>} : vector<2x8x8xi32>
    %68 = tpu.iota {dimensions = array<i32: 0>} : vector<8x8xi32>
    %69 = tpu.iota {dimensions = array<i32: 1>} : vector<8x8xi32>
    %c1_i32_54 = arith.constant 1 : i32
    %70 = vector.broadcast %c1_i32_54 : i32 to vector<8x8xi32>
    %71 = arith.addi %68, %70 : vector<8x8xi32>
    %72 = arith.cmpi eq, %69, %71 : vector<8x8xi32>
    %73 = arith.extui %72 : vector<8x8xi1> to vector<8x8xi32>
    %74 = arith.sitofp %73 : vector<8x8xi32> to vector<8x8xf32>
    %cst_55 = arith.constant dense<0.000000e+00> : vector<2x8xf32>
    %75 = tpu.matmul %65, %74, %cst_55 {dimension_numbers = #tpu.dot_dimension_numbers<[1], [0], [0], [1], [0, 0, 1, 1], [], []>} : vector<2x8xf32>, vector<8x8xf32>, vector<2x8xf32> -> vector<2x8xf32>
    %76 = arith.subf %75, %65 : vector<2x8xf32>
    %cst_56 = arith.constant 5.000000e+00 : f32
    %77 = vector.broadcast %cst_56 : f32 to vector<2x8xf32>
    %78 = arith.mulf %76, %77 : vector<2x8xf32>
    %cst_57 = arith.constant 5.000000e-01 : f32
    %79 = vector.broadcast %cst_57 : f32 to vector<2x8xf32>
    %80 = arith.addf %78, %79 : vector<2x8xf32>
    %cst_58 = arith.constant 0.000000e+00 : f32
    %cst_59 = arith.constant 1.000000e+00 : f32
    %81 = vector.broadcast %cst_58 : f32 to vector<2x8xf32>
    %82 = arith.maximumf %81, %80 : vector<2x8xf32>
    %83 = vector.broadcast %cst_59 : f32 to vector<2x8xf32>
    %84 = arith.minimumf %83, %82 : vector<2x8xf32>
    %85 = vector.shape_cast %65 : vector<2x8xf32> to vector<1x2x8xf32>
    %cst_60 = arith.constant dense<0x7F800000> : vector<1xf32>
    %86 = vector.multi_reduction <minimumf>, %85, %cst_60 [1, 2] : vector<1x2x8xf32> to vector<1xf32>
    %87 = vector.shape_cast %86 : vector<1xf32> to vector<1x1x1xf32>
    %88 = vector.extract %87[0, 0, 0] : f32 from vector<1x1x1xf32>
    %89 = vector.broadcast %88 : f32 to vector<2x8xf32>
    %90 = arith.subf %65, %89 : vector<2x8xf32>
    %cst_61 = arith.constant 1.000000e+01 : f32
    %91 = vector.broadcast %cst_61 : f32 to vector<2x8xf32>
    %92 = arith.addf %90, %91 : vector<2x8xf32>
    %cst_62 = arith.constant 1.000000e+00 : f32
    %93 = vector.broadcast %cst_62 : f32 to vector<2x8xf32>
    %cst_63 = arith.constant 0.000000e+00 : f32
    %94 = vector.broadcast %cst_63 : f32 to vector<2x8xf32>
    %cst_64 = arith.constant 0.000000e+00 : f32
    %95 = vector.broadcast %cst_64 : f32 to vector<2x8x8xf32>
    %96 = vector.extract_strided_slice %75 {offsets = [0, 0], sizes = [2, 1], strides = [1, 1]} : vector<2x8xf32> to vector<2x1xf32>
    %97 = vector.broadcast %96 : vector<2x1xf32> to vector<2x8xf32>
    %98 = arith.subf %97, %65 : vector<2x8xf32>
    %cst_65 = arith.constant 5.000000e+00 : f32
    %99 = vector.broadcast %cst_65 : f32 to vector<2x8xf32>
    %100 = arith.mulf %98, %99 : vector<2x8xf32>
    %cst_66 = arith.constant 5.000000e-01 : f32
    %101 = vector.broadcast %cst_66 : f32 to vector<2x8xf32>
    %102 = arith.addf %100, %101 : vector<2x8xf32>
    %cst_67 = arith.constant 0.000000e+00 : f32
    %cst_68 = arith.constant 1.000000e+00 : f32
    %103 = vector.broadcast %cst_67 : f32 to vector<2x8xf32>
    %104 = arith.maximumf %103, %102 : vector<2x8xf32>
    %105 = vector.broadcast %cst_68 : f32 to vector<2x8xf32>
    %106 = arith.minimumf %105, %104 : vector<2x8xf32>
    %c-2_i32 = arith.constant -2 : i32
    %107 = vector.broadcast %c-2_i32 : i32 to vector<2x8xi32>
    %108 = arith.cmpi sle, %66, %107 : vector<2x8xi32>
    %109 = vector.extract_strided_slice %84 {offsets = [0, 0], sizes = [2, 1], strides = [1, 1]} : vector<2x8xf32> to vector<2x1xf32>
    %110 = vector.broadcast %109 : vector<2x1xf32> to vector<2x8xf32>
    %111 = arith.mulf %106, %110 : vector<2x8xf32>
    %cst_69 = arith.constant 1.000000e+00 : f32
    %112 = vector.broadcast %cst_69 : f32 to vector<2x8xf32>
    %113 = arith.subf %112, %111 : vector<2x8xf32>
    %cst_70 = arith.constant 1.000000e+00 : f32
    %114 = vector.broadcast %cst_70 : f32 to vector<2x8xf32>
    %115 = arith.select %108, %113, %114 : vector<2x8xi1>, vector<2x8xf32>
    %116 = arith.mulf %93, %115 : vector<2x8xf32>
    %c0_i32_71 = arith.constant 0 : i32
    %117 = vector.broadcast %c0_i32_71 : i32 to vector<2x8xi32>
    %118 = arith.cmpi slt, %66, %117 : vector<2x8xi32>
    %119 = vector.extract_strided_slice %92 {offsets = [0, 0], sizes = [2, 1], strides = [1, 1]} : vector<2x8xf32> to vector<2x1xf32>
    %cst_72 = arith.constant 0.000000e+00 : f32
    %120 = vector.shape_cast %119 : vector<2x1xf32> to vector<2x1xf32>
    %121 = vector.broadcast %120 : vector<2x1xf32> to vector<2x8xf32>
    %122 = vector.broadcast %cst_72 : f32 to vector<2x8xf32>
    %123 = arith.select %118, %121, %122 : vector<2x8xi1>, vector<2x8xf32>
    %124 = arith.mulf %116, %123 : vector<2x8xf32>
    %125 = arith.addf %94, %124 : vector<2x8xf32>
    %c0_i32_73 = arith.constant 0 : i32
    %126 = vector.broadcast %c0_i32_73 : i32 to vector<2x8x8xi32>
    %127 = arith.cmpi eq, %67, %126 : vector<2x8x8xi32>
    %128 = vector.shape_cast %124 : vector<2x8xf32> to vector<2x1x8xf32>
    %129 = vector.shape_cast %128 : vector<2x1x8xf32> to vector<2x1x8xf32>
    %130 = vector.broadcast %129 : vector<2x1x8xf32> to vector<2x8x8xf32>
    %131 = arith.select %127, %130, %95 : vector<2x8x8xi1>, vector<2x8x8xf32>
    %132 = vector.extract_strided_slice %75 {offsets = [0, 1], sizes = [2, 1], strides = [1, 1]} : vector<2x8xf32> to vector<2x1xf32>
    %133 = vector.broadcast %132 : vector<2x1xf32> to vector<2x8xf32>
    %134 = arith.subf %133, %65 : vector<2x8xf32>
    %cst_74 = arith.constant 5.000000e+00 : f32
    %135 = vector.broadcast %cst_74 : f32 to vector<2x8xf32>
    %136 = arith.mulf %134, %135 : vector<2x8xf32>
    %cst_75 = arith.constant 5.000000e-01 : f32
    %137 = vector.broadcast %cst_75 : f32 to vector<2x8xf32>
    %138 = arith.addf %136, %137 : vector<2x8xf32>
    %cst_76 = arith.constant 0.000000e+00 : f32
    %cst_77 = arith.constant 1.000000e+00 : f32
    %139 = vector.broadcast %cst_76 : f32 to vector<2x8xf32>
    %140 = arith.maximumf %139, %138 : vector<2x8xf32>
    %141 = vector.broadcast %cst_77 : f32 to vector<2x8xf32>
    %142 = arith.minimumf %141, %140 : vector<2x8xf32>
    %c-1_i32 = arith.constant -1 : i32
    %143 = vector.broadcast %c-1_i32 : i32 to vector<2x8xi32>
    %144 = arith.cmpi sle, %66, %143 : vector<2x8xi32>
    %145 = vector.extract_strided_slice %84 {offsets = [0, 1], sizes = [2, 1], strides = [1, 1]} : vector<2x8xf32> to vector<2x1xf32>
    %146 = vector.broadcast %145 : vector<2x1xf32> to vector<2x8xf32>
    %147 = arith.mulf %142, %146 : vector<2x8xf32>
    %cst_78 = arith.constant 1.000000e+00 : f32
    %148 = vector.broadcast %cst_78 : f32 to vector<2x8xf32>
    %149 = arith.subf %148, %147 : vector<2x8xf32>
    %cst_79 = arith.constant 1.000000e+00 : f32
    %150 = vector.broadcast %cst_79 : f32 to vector<2x8xf32>
    %151 = arith.select %144, %149, %150 : vector<2x8xi1>, vector<2x8xf32>
    %152 = arith.mulf %116, %151 : vector<2x8xf32>
    %c1_i32_80 = arith.constant 1 : i32
    %153 = vector.broadcast %c1_i32_80 : i32 to vector<2x8xi32>
    %154 = arith.cmpi slt, %66, %153 : vector<2x8xi32>
    %155 = vector.extract_strided_slice %92 {offsets = [0, 1], sizes = [2, 1], strides = [1, 1]} : vector<2x8xf32> to vector<2x1xf32>
    %cst_81 = arith.constant 0.000000e+00 : f32
    %156 = vector.shape_cast %155 : vector<2x1xf32> to vector<2x1xf32>
    %157 = vector.broadcast %156 : vector<2x1xf32> to vector<2x8xf32>
    %158 = vector.broadcast %cst_81 : f32 to vector<2x8xf32>
    %159 = arith.select %154, %157, %158 : vector<2x8xi1>, vector<2x8xf32>
    %160 = arith.mulf %152, %159 : vector<2x8xf32>
    %161 = arith.addf %125, %160 : vector<2x8xf32>
    %c1_i32_82 = arith.constant 1 : i32
    %162 = vector.broadcast %c1_i32_82 : i32 to vector<2x8x8xi32>
    %163 = arith.cmpi eq, %67, %162 : vector<2x8x8xi32>
    %164 = vector.shape_cast %160 : vector<2x8xf32> to vector<2x1x8xf32>
    %165 = vector.shape_cast %164 : vector<2x1x8xf32> to vector<2x1x8xf32>
    %166 = vector.broadcast %165 : vector<2x1x8xf32> to vector<2x8x8xf32>
    %167 = arith.select %163, %166, %131 : vector<2x8x8xi1>, vector<2x8x8xf32>
    %168 = vector.extract_strided_slice %75 {offsets = [0, 2], sizes = [2, 1], strides = [1, 1]} : vector<2x8xf32> to vector<2x1xf32>
    %169 = vector.broadcast %168 : vector<2x1xf32> to vector<2x8xf32>
    %170 = arith.subf %169, %65 : vector<2x8xf32>
    %cst_83 = arith.constant 5.000000e+00 : f32
    %171 = vector.broadcast %cst_83 : f32 to vector<2x8xf32>
    %172 = arith.mulf %170, %171 : vector<2x8xf32>
    %cst_84 = arith.constant 5.000000e-01 : f32
    %173 = vector.broadcast %cst_84 : f32 to vector<2x8xf32>
    %174 = arith.addf %172, %173 : vector<2x8xf32>
    %cst_85 = arith.constant 0.000000e+00 : f32
    %cst_86 = arith.constant 1.000000e+00 : f32
    %175 = vector.broadcast %cst_85 : f32 to vector<2x8xf32>
    %176 = arith.maximumf %175, %174 : vector<2x8xf32>
    %177 = vector.broadcast %cst_86 : f32 to vector<2x8xf32>
    %178 = arith.minimumf %177, %176 : vector<2x8xf32>
    %c0_i32_87 = arith.constant 0 : i32
    %179 = vector.broadcast %c0_i32_87 : i32 to vector<2x8xi32>
    %180 = arith.cmpi sle, %66, %179 : vector<2x8xi32>
    %181 = vector.extract_strided_slice %84 {offsets = [0, 2], sizes = [2, 1], strides = [1, 1]} : vector<2x8xf32> to vector<2x1xf32>
    %182 = vector.broadcast %181 : vector<2x1xf32> to vector<2x8xf32>
    %183 = arith.mulf %178, %182 : vector<2x8xf32>
    %cst_88 = arith.constant 1.000000e+00 : f32
    %184 = vector.broadcast %cst_88 : f32 to vector<2x8xf32>
    %185 = arith.subf %184, %183 : vector<2x8xf32>
    %cst_89 = arith.constant 1.000000e+00 : f32
    %186 = vector.broadcast %cst_89 : f32 to vector<2x8xf32>
    %187 = arith.select %180, %185, %186 : vector<2x8xi1>, vector<2x8xf32>
    %188 = arith.mulf %152, %187 : vector<2x8xf32>
    %c2_i32 = arith.constant 2 : i32
    %189 = vector.broadcast %c2_i32 : i32 to vector<2x8xi32>
    %190 = arith.cmpi slt, %66, %189 : vector<2x8xi32>
    %191 = vector.extract_strided_slice %92 {offsets = [0, 2], sizes = [2, 1], strides = [1, 1]} : vector<2x8xf32> to vector<2x1xf32>
    %cst_90 = arith.constant 0.000000e+00 : f32
    %192 = vector.shape_cast %191 : vector<2x1xf32> to vector<2x1xf32>
    %193 = vector.broadcast %192 : vector<2x1xf32> to vector<2x8xf32>
    %194 = vector.broadcast %cst_90 : f32 to vector<2x8xf32>
    %195 = arith.select %190, %193, %194 : vector<2x8xi1>, vector<2x8xf32>
    %196 = arith.mulf %188, %195 : vector<2x8xf32>
    %197 = arith.addf %161, %196 : vector<2x8xf32>
    %c2_i32_91 = arith.constant 2 : i32
    %198 = vector.broadcast %c2_i32_91 : i32 to vector<2x8x8xi32>
    %199 = arith.cmpi eq, %67, %198 : vector<2x8x8xi32>
    %200 = vector.shape_cast %196 : vector<2x8xf32> to vector<2x1x8xf32>
    %201 = vector.shape_cast %200 : vector<2x1x8xf32> to vector<2x1x8xf32>
    %202 = vector.broadcast %201 : vector<2x1x8xf32> to vector<2x8x8xf32>
    %203 = arith.select %199, %202, %167 : vector<2x8x8xi1>, vector<2x8x8xf32>
    %204 = vector.extract_strided_slice %75 {offsets = [0, 3], sizes = [2, 1], strides = [1, 1]} : vector<2x8xf32> to vector<2x1xf32>
    %205 = vector.broadcast %204 : vector<2x1xf32> to vector<2x8xf32>
    %206 = arith.subf %205, %65 : vector<2x8xf32>
    %cst_92 = arith.constant 5.000000e+00 : f32
    %207 = vector.broadcast %cst_92 : f32 to vector<2x8xf32>
    %208 = arith.mulf %206, %207 : vector<2x8xf32>
    %cst_93 = arith.constant 5.000000e-01 : f32
    %209 = vector.broadcast %cst_93 : f32 to vector<2x8xf32>
    %210 = arith.addf %208, %209 : vector<2x8xf32>
    %cst_94 = arith.constant 0.000000e+00 : f32
    %cst_95 = arith.constant 1.000000e+00 : f32
    %211 = vector.broadcast %cst_94 : f32 to vector<2x8xf32>
    %212 = arith.maximumf %211, %210 : vector<2x8xf32>
    %213 = vector.broadcast %cst_95 : f32 to vector<2x8xf32>
    %214 = arith.minimumf %213, %212 : vector<2x8xf32>
    %c1_i32_96 = arith.constant 1 : i32
    %215 = vector.broadcast %c1_i32_96 : i32 to vector<2x8xi32>
    %216 = arith.cmpi sle, %66, %215 : vector<2x8xi32>
    %217 = vector.extract_strided_slice %84 {offsets = [0, 3], sizes = [2, 1], strides = [1, 1]} : vector<2x8xf32> to vector<2x1xf32>
    %218 = vector.broadcast %217 : vector<2x1xf32> to vector<2x8xf32>
    %219 = arith.mulf %214, %218 : vector<2x8xf32>
    %cst_97 = arith.constant 1.000000e+00 : f32
    %220 = vector.broadcast %cst_97 : f32 to vector<2x8xf32>
    %221 = arith.subf %220, %219 : vector<2x8xf32>
    %cst_98 = arith.constant 1.000000e+00 : f32
    %222 = vector.broadcast %cst_98 : f32 to vector<2x8xf32>
    %223 = arith.select %216, %221, %222 : vector<2x8xi1>, vector<2x8xf32>
    %224 = arith.mulf %188, %223 : vector<2x8xf32>
    %c3_i32 = arith.constant 3 : i32
    %225 = vector.broadcast %c3_i32 : i32 to vector<2x8xi32>
    %226 = arith.cmpi slt, %66, %225 : vector<2x8xi32>
    %227 = vector.extract_strided_slice %92 {offsets = [0, 3], sizes = [2, 1], strides = [1, 1]} : vector<2x8xf32> to vector<2x1xf32>
    %cst_99 = arith.constant 0.000000e+00 : f32
    %228 = vector.shape_cast %227 : vector<2x1xf32> to vector<2x1xf32>
    %229 = vector.broadcast %228 : vector<2x1xf32> to vector<2x8xf32>
    %230 = vector.broadcast %cst_99 : f32 to vector<2x8xf32>
    %231 = arith.select %226, %229, %230 : vector<2x8xi1>, vector<2x8xf32>
    %232 = arith.mulf %224, %231 : vector<2x8xf32>
    %233 = arith.addf %197, %232 : vector<2x8xf32>
    %c3_i32_100 = arith.constant 3 : i32
    %234 = vector.broadcast %c3_i32_100 : i32 to vector<2x8x8xi32>
    %235 = arith.cmpi eq, %67, %234 : vector<2x8x8xi32>
    %236 = vector.shape_cast %232 : vector<2x8xf32> to vector<2x1x8xf32>
    %237 = vector.shape_cast %236 : vector<2x1x8xf32> to vector<2x1x8xf32>
    %238 = vector.broadcast %237 : vector<2x1x8xf32> to vector<2x8x8xf32>
    %239 = arith.select %235, %238, %203 : vector<2x8x8xi1>, vector<2x8x8xf32>
    %240 = vector.extract_strided_slice %75 {offsets = [0, 4], sizes = [2, 1], strides = [1, 1]} : vector<2x8xf32> to vector<2x1xf32>
    %241 = vector.broadcast %240 : vector<2x1xf32> to vector<2x8xf32>
    %242 = arith.subf %241, %65 : vector<2x8xf32>
    %cst_101 = arith.constant 5.000000e+00 : f32
    %243 = vector.broadcast %cst_101 : f32 to vector<2x8xf32>
    %244 = arith.mulf %242, %243 : vector<2x8xf32>
    %cst_102 = arith.constant 5.000000e-01 : f32
    %245 = vector.broadcast %cst_102 : f32 to vector<2x8xf32>
    %246 = arith.addf %244, %245 : vector<2x8xf32>
    %cst_103 = arith.constant 0.000000e+00 : f32
    %cst_104 = arith.constant 1.000000e+00 : f32
    %247 = vector.broadcast %cst_103 : f32 to vector<2x8xf32>
    %248 = arith.maximumf %247, %246 : vector<2x8xf32>
    %249 = vector.broadcast %cst_104 : f32 to vector<2x8xf32>
    %250 = arith.minimumf %249, %248 : vector<2x8xf32>
    %c2_i32_105 = arith.constant 2 : i32
    %251 = vector.broadcast %c2_i32_105 : i32 to vector<2x8xi32>
    %252 = arith.cmpi sle, %66, %251 : vector<2x8xi32>
    %253 = vector.extract_strided_slice %84 {offsets = [0, 4], sizes = [2, 1], strides = [1, 1]} : vector<2x8xf32> to vector<2x1xf32>
    %254 = vector.broadcast %253 : vector<2x1xf32> to vector<2x8xf32>
    %255 = arith.mulf %250, %254 : vector<2x8xf32>
    %cst_106 = arith.constant 1.000000e+00 : f32
    %256 = vector.broadcast %cst_106 : f32 to vector<2x8xf32>
    %257 = arith.subf %256, %255 : vector<2x8xf32>
    %cst_107 = arith.constant 1.000000e+00 : f32
    %258 = vector.broadcast %cst_107 : f32 to vector<2x8xf32>
    %259 = arith.select %252, %257, %258 : vector<2x8xi1>, vector<2x8xf32>
    %260 = arith.mulf %224, %259 : vector<2x8xf32>
    %c4_i32 = arith.constant 4 : i32
    %261 = vector.broadcast %c4_i32 : i32 to vector<2x8xi32>
    %262 = arith.cmpi slt, %66, %261 : vector<2x8xi32>
    %263 = vector.extract_strided_slice %92 {offsets = [0, 4], sizes = [2, 1], strides = [1, 1]} : vector<2x8xf32> to vector<2x1xf32>
    %cst_108 = arith.constant 0.000000e+00 : f32
    %264 = vector.shape_cast %263 : vector<2x1xf32> to vector<2x1xf32>
    %265 = vector.broadcast %264 : vector<2x1xf32> to vector<2x8xf32>
    %266 = vector.broadcast %cst_108 : f32 to vector<2x8xf32>
    %267 = arith.select %262, %265, %266 : vector<2x8xi1>, vector<2x8xf32>
    %268 = arith.mulf %260, %267 : vector<2x8xf32>
    %269 = arith.addf %233, %268 : vector<2x8xf32>
    %c4_i32_109 = arith.constant 4 : i32
    %270 = vector.broadcast %c4_i32_109 : i32 to vector<2x8x8xi32>
    %271 = arith.cmpi eq, %67, %270 : vector<2x8x8xi32>
    %272 = vector.shape_cast %268 : vector<2x8xf32> to vector<2x1x8xf32>
    %273 = vector.shape_cast %272 : vector<2x1x8xf32> to vector<2x1x8xf32>
    %274 = vector.broadcast %273 : vector<2x1x8xf32> to vector<2x8x8xf32>
    %275 = arith.select %271, %274, %239 : vector<2x8x8xi1>, vector<2x8x8xf32>
    %276 = vector.extract_strided_slice %75 {offsets = [0, 5], sizes = [2, 1], strides = [1, 1]} : vector<2x8xf32> to vector<2x1xf32>
    %277 = vector.broadcast %276 : vector<2x1xf32> to vector<2x8xf32>
    %278 = arith.subf %277, %65 : vector<2x8xf32>
    %cst_110 = arith.constant 5.000000e+00 : f32
    %279 = vector.broadcast %cst_110 : f32 to vector<2x8xf32>
    %280 = arith.mulf %278, %279 : vector<2x8xf32>
    %cst_111 = arith.constant 5.000000e-01 : f32
    %281 = vector.broadcast %cst_111 : f32 to vector<2x8xf32>
    %282 = arith.addf %280, %281 : vector<2x8xf32>
    %cst_112 = arith.constant 0.000000e+00 : f32
    %cst_113 = arith.constant 1.000000e+00 : f32
    %283 = vector.broadcast %cst_112 : f32 to vector<2x8xf32>
    %284 = arith.maximumf %283, %282 : vector<2x8xf32>
    %285 = vector.broadcast %cst_113 : f32 to vector<2x8xf32>
    %286 = arith.minimumf %285, %284 : vector<2x8xf32>
    %c3_i32_114 = arith.constant 3 : i32
    %287 = vector.broadcast %c3_i32_114 : i32 to vector<2x8xi32>
    %288 = arith.cmpi sle, %66, %287 : vector<2x8xi32>
    %289 = vector.extract_strided_slice %84 {offsets = [0, 5], sizes = [2, 1], strides = [1, 1]} : vector<2x8xf32> to vector<2x1xf32>
    %290 = vector.broadcast %289 : vector<2x1xf32> to vector<2x8xf32>
    %291 = arith.mulf %286, %290 : vector<2x8xf32>
    %cst_115 = arith.constant 1.000000e+00 : f32
    %292 = vector.broadcast %cst_115 : f32 to vector<2x8xf32>
    %293 = arith.subf %292, %291 : vector<2x8xf32>
    %cst_116 = arith.constant 1.000000e+00 : f32
    %294 = vector.broadcast %cst_116 : f32 to vector<2x8xf32>
    %295 = arith.select %288, %293, %294 : vector<2x8xi1>, vector<2x8xf32>
    %296 = arith.mulf %260, %295 : vector<2x8xf32>
    %c5_i32 = arith.constant 5 : i32
    %297 = vector.broadcast %c5_i32 : i32 to vector<2x8xi32>
    %298 = arith.cmpi slt, %66, %297 : vector<2x8xi32>
    %299 = vector.extract_strided_slice %92 {offsets = [0, 5], sizes = [2, 1], strides = [1, 1]} : vector<2x8xf32> to vector<2x1xf32>
    %cst_117 = arith.constant 0.000000e+00 : f32
    %300 = vector.shape_cast %299 : vector<2x1xf32> to vector<2x1xf32>
    %301 = vector.broadcast %300 : vector<2x1xf32> to vector<2x8xf32>
    %302 = vector.broadcast %cst_117 : f32 to vector<2x8xf32>
    %303 = arith.select %298, %301, %302 : vector<2x8xi1>, vector<2x8xf32>
    %304 = arith.mulf %296, %303 : vector<2x8xf32>
    %305 = arith.addf %269, %304 : vector<2x8xf32>
    %c5_i32_118 = arith.constant 5 : i32
    %306 = vector.broadcast %c5_i32_118 : i32 to vector<2x8x8xi32>
    %307 = arith.cmpi eq, %67, %306 : vector<2x8x8xi32>
    %308 = vector.shape_cast %304 : vector<2x8xf32> to vector<2x1x8xf32>
    %309 = vector.shape_cast %308 : vector<2x1x8xf32> to vector<2x1x8xf32>
    %310 = vector.broadcast %309 : vector<2x1x8xf32> to vector<2x8x8xf32>
    %311 = arith.select %307, %310, %275 : vector<2x8x8xi1>, vector<2x8x8xf32>
    %312 = vector.extract_strided_slice %75 {offsets = [0, 6], sizes = [2, 1], strides = [1, 1]} : vector<2x8xf32> to vector<2x1xf32>
    %313 = vector.broadcast %312 : vector<2x1xf32> to vector<2x8xf32>
    %314 = arith.subf %313, %65 : vector<2x8xf32>
    %cst_119 = arith.constant 5.000000e+00 : f32
    %315 = vector.broadcast %cst_119 : f32 to vector<2x8xf32>
    %316 = arith.mulf %314, %315 : vector<2x8xf32>
    %cst_120 = arith.constant 5.000000e-01 : f32
    %317 = vector.broadcast %cst_120 : f32 to vector<2x8xf32>
    %318 = arith.addf %316, %317 : vector<2x8xf32>
    %cst_121 = arith.constant 0.000000e+00 : f32
    %cst_122 = arith.constant 1.000000e+00 : f32
    %319 = vector.broadcast %cst_121 : f32 to vector<2x8xf32>
    %320 = arith.maximumf %319, %318 : vector<2x8xf32>
    %321 = vector.broadcast %cst_122 : f32 to vector<2x8xf32>
    %322 = arith.minimumf %321, %320 : vector<2x8xf32>
    %c4_i32_123 = arith.constant 4 : i32
    %323 = vector.broadcast %c4_i32_123 : i32 to vector<2x8xi32>
    %324 = arith.cmpi sle, %66, %323 : vector<2x8xi32>
    %325 = vector.extract_strided_slice %84 {offsets = [0, 6], sizes = [2, 1], strides = [1, 1]} : vector<2x8xf32> to vector<2x1xf32>
    %326 = vector.broadcast %325 : vector<2x1xf32> to vector<2x8xf32>
    %327 = arith.mulf %322, %326 : vector<2x8xf32>
    %cst_124 = arith.constant 1.000000e+00 : f32
    %328 = vector.broadcast %cst_124 : f32 to vector<2x8xf32>
    %329 = arith.subf %328, %327 : vector<2x8xf32>
    %cst_125 = arith.constant 1.000000e+00 : f32
    %330 = vector.broadcast %cst_125 : f32 to vector<2x8xf32>
    %331 = arith.select %324, %329, %330 : vector<2x8xi1>, vector<2x8xf32>
    %332 = arith.mulf %296, %331 : vector<2x8xf32>
    %c6_i32 = arith.constant 6 : i32
    %333 = vector.broadcast %c6_i32 : i32 to vector<2x8xi32>
    %334 = arith.cmpi slt, %66, %333 : vector<2x8xi32>
    %335 = vector.extract_strided_slice %92 {offsets = [0, 6], sizes = [2, 1], strides = [1, 1]} : vector<2x8xf32> to vector<2x1xf32>
    %cst_126 = arith.constant 0.000000e+00 : f32
    %336 = vector.shape_cast %335 : vector<2x1xf32> to vector<2x1xf32>
    %337 = vector.broadcast %336 : vector<2x1xf32> to vector<2x8xf32>
    %338 = vector.broadcast %cst_126 : f32 to vector<2x8xf32>
    %339 = arith.select %334, %337, %338 : vector<2x8xi1>, vector<2x8xf32>
    %340 = arith.mulf %332, %339 : vector<2x8xf32>
    %341 = arith.addf %305, %340 : vector<2x8xf32>
    %c6_i32_127 = arith.constant 6 : i32
    %342 = vector.broadcast %c6_i32_127 : i32 to vector<2x8x8xi32>
    %343 = arith.cmpi eq, %67, %342 : vector<2x8x8xi32>
    %344 = vector.shape_cast %340 : vector<2x8xf32> to vector<2x1x8xf32>
    %345 = vector.shape_cast %344 : vector<2x1x8xf32> to vector<2x1x8xf32>
    %346 = vector.broadcast %345 : vector<2x1x8xf32> to vector<2x8x8xf32>
    %347 = arith.select %343, %346, %311 : vector<2x8x8xi1>, vector<2x8x8xf32>
    %348 = vector.extract_strided_slice %75 {offsets = [0, 7], sizes = [2, 1], strides = [1, 1]} : vector<2x8xf32> to vector<2x1xf32>
    %349 = vector.broadcast %348 : vector<2x1xf32> to vector<2x8xf32>
    %350 = arith.subf %349, %65 : vector<2x8xf32>
    %cst_128 = arith.constant 5.000000e+00 : f32
    %351 = vector.broadcast %cst_128 : f32 to vector<2x8xf32>
    %352 = arith.mulf %350, %351 : vector<2x8xf32>
    %cst_129 = arith.constant 5.000000e-01 : f32
    %353 = vector.broadcast %cst_129 : f32 to vector<2x8xf32>
    %354 = arith.addf %352, %353 : vector<2x8xf32>
    %cst_130 = arith.constant 0.000000e+00 : f32
    %cst_131 = arith.constant 1.000000e+00 : f32
    %355 = vector.broadcast %cst_130 : f32 to vector<2x8xf32>
    %356 = arith.maximumf %355, %354 : vector<2x8xf32>
    %357 = vector.broadcast %cst_131 : f32 to vector<2x8xf32>
    %358 = arith.minimumf %357, %356 : vector<2x8xf32>
    %c5_i32_132 = arith.constant 5 : i32
    %359 = vector.broadcast %c5_i32_132 : i32 to vector<2x8xi32>
    %360 = arith.cmpi sle, %66, %359 : vector<2x8xi32>
    %361 = vector.extract_strided_slice %84 {offsets = [0, 7], sizes = [2, 1], strides = [1, 1]} : vector<2x8xf32> to vector<2x1xf32>
    %362 = vector.broadcast %361 : vector<2x1xf32> to vector<2x8xf32>
    %363 = arith.mulf %358, %362 : vector<2x8xf32>
    %cst_133 = arith.constant 1.000000e+00 : f32
    %364 = vector.broadcast %cst_133 : f32 to vector<2x8xf32>
    %365 = arith.subf %364, %363 : vector<2x8xf32>
    %cst_134 = arith.constant 1.000000e+00 : f32
    %366 = vector.broadcast %cst_134 : f32 to vector<2x8xf32>
    %367 = arith.select %360, %365, %366 : vector<2x8xi1>, vector<2x8xf32>
    %368 = arith.mulf %332, %367 : vector<2x8xf32>
    %c7_i32 = arith.constant 7 : i32
    %369 = vector.broadcast %c7_i32 : i32 to vector<2x8xi32>
    %370 = arith.cmpi slt, %66, %369 : vector<2x8xi32>
    %371 = vector.extract_strided_slice %92 {offsets = [0, 7], sizes = [2, 1], strides = [1, 1]} : vector<2x8xf32> to vector<2x1xf32>
    %cst_135 = arith.constant 0.000000e+00 : f32
    %372 = vector.shape_cast %371 : vector<2x1xf32> to vector<2x1xf32>
    %373 = vector.broadcast %372 : vector<2x1xf32> to vector<2x8xf32>
    %374 = vector.broadcast %cst_135 : f32 to vector<2x8xf32>
    %375 = arith.select %370, %373, %374 : vector<2x8xi1>, vector<2x8xf32>
    %376 = arith.mulf %368, %375 : vector<2x8xf32>
    %377 = arith.addf %341, %376 : vector<2x8xf32>
    %c7_i32_136 = arith.constant 7 : i32
    %378 = vector.broadcast %c7_i32_136 : i32 to vector<2x8x8xi32>
    %379 = arith.cmpi eq, %67, %378 : vector<2x8x8xi32>
    %380 = vector.shape_cast %376 : vector<2x8xf32> to vector<2x1x8xf32>
    %381 = vector.shape_cast %380 : vector<2x1x8xf32> to vector<2x1x8xf32>
    %382 = vector.broadcast %381 : vector<2x1x8xf32> to vector<2x8x8xf32>
    %383 = arith.select %379, %382, %347 : vector<2x8x8xi1>, vector<2x8x8xf32>
    %cst_137 = arith.constant 0.000000e+00 : f32
    %384 = vector.broadcast %cst_137 : f32 to vector<2x8xf32>
    %385 = arith.cmpf ogt, %377, %384 : vector<2x8xf32>
    %cst_138 = arith.constant 1.000000e+00 : f32
    %386 = vector.broadcast %cst_138 : f32 to vector<2x8xf32>
    %387 = arith.select %385, %377, %386 : vector<2x8xi1>, vector<2x8xf32>
    %cst_139 = arith.constant 1.000000e+00 : f32
    %388 = vector.broadcast %cst_139 : f32 to vector<2x8xf32>
    %389 = arith.divf %388, %387 : vector<2x8xf32>
    %390 = vector.shape_cast %389 : vector<2x8xf32> to vector<2x1x8xf32>
    %391 = vector.broadcast %390 : vector<2x1x8xf32> to vector<2x8x8xf32>
    %392 = arith.mulf %383, %391 : vector<2x8x8xf32>
    %c0_140 = arith.constant 0 : index
    %c0_141 = arith.constant 0 : index
    %c0_142 = arith.constant 0 : index
    %393 = vector.load %arg5[%c0_140, %c0_141, %c0_142] : memref<2x8x8xf32, #tpu.memory_space<vmem>>, vector<2x8x8xf32>
    tpu.vector_store %arg5[%c0_140, %c0_141, %c0_142], %392 {strides = array<i32>} : memref<2x8x8xf32, #tpu.memory_space<vmem>>, vector<2x8x8xf32>,
    %394 = arith.mulf %65, %65 : vector<2x8xf32>
    %395 = vector.shape_cast %394 : vector<2x8xf32> to vector<1x2x8xf32>
    %cst_143 = arith.constant dense<0.000000e+00> : vector<1xf32>
    %396 = vector.multi_reduction <add>, %395, %cst_143 [1, 2] : vector<1x2x8xf32> to vector<1xf32>
    %397 = vector.shape_cast %396 : vector<1xf32> to vector<1x1x1xf32>
    %398 = vector.extract %397[0, 0, 0] : f32 from vector<1x1x1xf32>
    %cst_144 = arith.constant 1.600000e+01 : f32
    %399 = arith.divf %398, %cst_144 : f32
    %c0_145 = arith.constant 0 : index
    %400 = memref.load %arg6[%c0_145] : memref<1xf32, #tpu.memory_space<smem>>
    memref.store %399, %arg6[%c0_145] : memref<1xf32, #tpu.memory_space<smem>>
    return
  }
}

</mosaic_0001>

<bundles_post_ra>
// kernel: tpu_custom_call.1
= control target key start
LH: loop header
LB: loop body
LE: loop exit
PB: predicated region body
PF: predicated region fallthrough
CT: control target
= control target key end

     0   :  { %s2120_s0 = inlined_call_operand.vmem [shape: f32[2,4,12], index: 0, kind: input, shape index: {}]   ;;  %s2121_s1 = inlined_call_operand.vmem [shape: f32[3,32,4], index: 1, kind: input, shape index: {}]   ;;  %s2122_s2 = inlined_call_operand.vmem [shape: f32[32,1], index: 2, kind: input, shape index: {}]   ;;  %s2123_s3 = inlined_call_operand.vmem [shape: f32[1,32], index: 3, kind: input, shape index: {}]   ;;  %s2124_s4 = inlined_call_operand.<no memory space> [shape: f32[1,1], index: 4, kind: input, shape index: {}]   ;;  %s2125_s5 = inlined_call_operand.hbm [shape: f32[2,8,8], index: 5, kind: output, shape index: {0}]   ;;  %s2126_s6 = inlined_call_operand.hbm [shape: f32[1], index: 6, kind: output, shape index: {1}]  }
   0x1   :  { %v12_v0 = vstv %s2124_s4 }
   0x2   :  { %13 = vst [vmem:[#allocation2] sm:$0x1] %v12_v0 }
   0x3   :  { %14 = vsyncpa [#allocation4], 0  ;;  %v26_v1 = vld [vmem:[%s2120_s0] sm:$0xf]  ;;  %s1781_s27 = smov 126   ;;  %vm39_vm0 = vcmask 31744  }
   0x4   :  { %v1844_v2 = vld [vmem:[%s2121_s1 + $0x20] sm:$0xff]  ;;  %37 = vrot.lane.b32.xlu0 %v26_v1, %s1781_s27 }
   0x5   :  { %1599 = vmatprep.mubr.msk.f32.mxu0 %vm39_vm0, %v1844_v2 }
   0x6   :  { %15 = vsyncpa [#allocation5], 0  ;;  %s1782_s28 = smov 124   ;;  %v349_v3 = vld [vmem:[%s2122_s2] sm:$0xff]  ;;  %v1783_v4 = vmov 0   ;;  %v351_v5 = vld [vmem:[%s2122_s2 + $0x10] sm:$0xff]  ;;  %v388_v62 = vlaneseq }
   0x7   :  { %1723 = vset.pattern.permute.xlu1 %v1783_v4  ;;  %1724 = vset.pattern.permute.xlu0 %v1783_v4  ;;  %v350_v6 = vld [vmem:[%s2122_s2 + $0x8] sm:$0xff]  ;;  %v1860_v7 = vld [vmem:[%s2120_s0 + $0x4] sm:$0xf]  ;;  %v352_v8 = vld [vmem:[%s2122_s2 + $0x18] sm:$0xff]  ;;  %vm52_vm1 = vcmask 1043456   ;;  %v1784_v23 = vmov 0.0|0.0  }
   0x8   :  { %244 = vrot.lane.b32.xlu0 %v26_v1, %s1782_s28  ;;  %355 = vperm.xlu1 %1723, %v349_v3   ;;  %v1870_v11 = vld [vmem:[%s2121_s1 + $0x28] sm:$0xff]  ;;  %v1876_v12 = vld [vmem:[%s2121_s1 + $0x30] sm:$0xff]  ;;  %v1514_v13 = vld [vmem:[%s2121_s1 + $0x38] sm:$0xff]  ;;  %vm1785_vm2 = vmmov 0   ;;  %v1786_v24 = vmov 0.0   ;;  %vm392_vm3 = vcmask 261120  }
   0x9   :  { %v382_v9 = vld [vmem:[#allocation2] sm:$0x1]  ;;  %v28_v16 = vld [vmem:[%s2121_s1 + $0x8] sm:$0xff]  ;;  %v29_v17 = vld [vmem:[%s2121_s1 + $0x10] sm:$0xff]  ;;  %1672 = vmatprep.subr.bf16.mxu1 %v1784_v23  ;;  %1629 = vmatprep.mubr.msk.f32.mxu1 %vm1785_vm2, %v1786_v24  ;;  %v1962_v63 = vshrl.u32 %v388_v62, 7  ;;  %v1964_v0 = vand.u32 127, %v388_v62 }
   0xa   :  { %v27_v15 = vld [vmem:[%s2121_s1] sm:$0xff]  ;;  %v30_v18 = vld [vmem:[%s2121_s1 + $0x18] sm:$0xff]  ;;  %v1526_v20 = vld [vmem:[%s2121_s1 + $0x48] sm:$0xff]  ;;  %vm836_vm7 = vcmask 64512   ;;  %vm915_vm8 = vcmask 58368   ;;  %s1745_s14 = scalar_lea.hbm %s2126_s6, 16 }
   0xb   :  { %v1525_v19 = vld [vmem:[%s2121_s1 + $0x40] sm:$0xff]  ;;  %v1527_v21 = vld [vmem:[%s2121_s1 + $0x50] sm:$0xff]  ;;  %v1528_v22 = vld [vmem:[%s2121_s1 + $0x58] sm:$0xff]  ;;  %v1969_v3 = vsub.s32 0, %v1962_v63  ;;  %vm818_vm5 = vcmp.eq.s32.totalorder %v1962_v63, 0  ;;  %vm824_vm6 = vcmp.eq.s32.totalorder %v1962_v63, 1  ;;  %p1746_p0 = scmp.ne.s32.totalorder %s2126_s6, %s1745_s14  ;;  %p1749_p1 = scmp.lt.u32.totalorder %s1745_s14, %s2126_s6 }
   0xc   :  { %365 = vperm.xlu0 %1724, %v351_v5   ;;  %360 = vperm.xlu1 %1723, %v350_v6   ;;  %v381_v44 = vld [vmem:[%s2123_s3] sm:$0x1] }
   0xd   :  { %p1751_p2 = pnand %p1749_p1, %p1746_p0 }
  0x10   :  { %645 = vrot.lane.b32.xlu0 %v1860_v7, %s1782_s28  ;;  %370 = vperm.xlu1 %1723, %v352_v8  }
  0x14   :  { %469 = vrot.lane.b32.xlu1 %v1860_v7, %s1781_s27 }
  0x18   :  { %385 = vperm.xlu1 %1723, %v382_v9  }
  0x76   :  { %v38_v10 = vpop.permute.xlu0 %37 }
  0x77   :  { %1597 = vmatprep.subr.msk.mxu0 %vm52_vm1, %v38_v10 }
  0x78   :  { %1598 = vmatpush3.msk.msra.mxu0 %vm52_vm1, %v38_v10 }
  0x79   :  { %1600 = vmatmul.mubr.msk.f32.vlgmr.msra.gmra.mrb[0].mxu0 %vm39_vm0, %v1870_v11  ;;  %1605 = vmatprep.subr.msk.mxu0 %vm52_vm1, %v26_v1 }
  0x7a   :  { %1606 = vmatpush3.msk.msra.mxu0 %vm52_vm1, %v26_v1  ;;  %1602 = vmatprep.mubr.msk.f32.mxu0 %vm39_vm0, %v1876_v12  ;;  %v245_v14 = vpop.permute.xlu0 %244  ;;  %v832_v1 = vadd.s32 1, %v1962_v63 }
  0x7b   :  { %1613 = vmatprep.subr.msk.mxu0 %vm52_vm1, %v245_v14 }
  0x7c   :  { %vm833_vm4 = vcmp.eq.s32.totalorder %v1964_v0, %v832_v1 }
  0x7d   :  { %1603 = vmatmul.mubr.msk.f32.gmra.mrb[2].mxu0 %vm39_vm0, %v1514_v13 }
  0x7e   :  { %1607 = vmatprep.mubr.msk.f32.mxu0 %vm39_vm0, %v27_v15 }
  0x81   :  { %1608 = vmatmul.mubr.msk.f32.vlgmr.msra.gmra.mrb[0].mxu0 %vm39_vm0, %v28_v16 }
  0x82   :  { %1614 = vmatpush3.msk.msra.mxu0 %vm52_vm1, %v245_v14  ;;  %1610 = vmatprep.mubr.msk.f32.mxu0 %vm39_vm0, %v29_v17 }
  0x83   :  { %1678 = vmatprep.subr.bf16.mxu0 %v1784_v23 }
  0x85   :  { %1611 = vmatmul.mubr.msk.f32.gmra.mrb[2].mxu0 %vm39_vm0, %v30_v18 }
  0x86   :  { %1615 = vmatprep.mubr.msk.f32.mxu0 %vm39_vm0, %v1525_v19 }
  0x87   :  { %v356_v25 = vpop.permute.xlu1 %355 }
  0x89   :  { %1616 = vmatmul.mubr.msk.f32.vlgmr.msra.gmra.mrb[0].mxu0 %vm39_vm0, %v1526_v20 }
  0x8a   :  { %1618 = vmatprep.mubr.msk.f32.mxu0 %vm39_vm0, %v1527_v21 }
  0x8b   :  { %v361_v26 = vpop.permute.xlu1 %360  ;;  %v366_v32 = vpop.permute.xlu0 %365 }
  0x8d   :  { %1619 = vmatmul.mubr.msk.f32.gmra.mrb[2].mxu0 %vm39_vm0, %v1528_v22 }
  0x8e   :  { %1664 = vmatprep.mubr.msk.f32.mxu0 %vm1785_vm2, %v1786_v24 }
  0x8f   :  { %v371_v33 = vpop.permute.xlu1 %370  ;;  %v646_v45 = vpop.permute.xlu0 %645 }
  0x93   :  { %v470_v43 = vpop.permute.xlu1 %469 }
  0x97   :  { %v386_v4 = vpop.permute.xlu1 %385 }
  0x98   :  { %v391_v5 = vrot.slane %v386_v4, %v1969_v3 }
 0x15c   :  { %v1617_v27 = vpop.f32.mrb[0].mxu0 }
 0x15d   :  { %v374_v28 = vadd.f32 %v1617_v27, %v361_v26  ;;  %v326_v29 = vpop.f32.mrb[1].mxu0 }
 0x15e   :  { %v373_v30 = vadd.f32 %v356_v25, %v326_v29 }
 0x15f   :  { %v378_v31 = vmax.f32 %v374_v28, 0.0 }
 0x160   :  { %v377_v34 = vmax.f32 %v373_v30, 0.0  ;;  %v1620_v35 = vpop.f32.mrb[2].mxu0 }
 0x161   :  { %v376_v36 = vadd.f32 %v1620_v35, %v371_v33  ;;  %v336_v37 = vpop.f32.mrb[3].mxu0 }
 0x162   :  { %v375_v38 = vadd.f32 %v366_v32, %v336_v37  ;;  %v1673_v39 = vpack.c.bf16 %v378_v31, %v377_v34 }
 0x163   :  { %v380_v40 = vmax.f32 %v376_v36, 0.0 }
 0x164   :  { %v379_v41 = vmax.f32 %v375_v38, 0.0  ;;  %1674 = vmatpush3.bf16.msra.mxu1 %v1673_v39 }
 0x165   :  { %1675 = vmatprep.subr.bf16.mxu1 %v1784_v23 }
 0x166   :  { %v1676_v42 = vpack.c.bf16 %v380_v40, %v379_v41  ;;  %v1789_v40 = vmov 3  }
 0x168   :  { %1677 = vmatpush3.bf16.msra.mxu1 %v1676_v42  ;;  %v1790_v42 = vmov 1  }
 0x169   :  { %1632 = vmatprep.subr.msk.mxu1 %vm52_vm1, %v470_v43 }
 0x16b   :  { %1630 = vmatmul.mubr.msk.f32.vlgmr.msra.gmra.mrb[0].mxu1 %vm392_vm3, %v381_v44 }
 0x16c   :  { %1633 = vmatpush3.msk.msra.mxu1 %vm52_vm1, %v470_v43  ;;  %1634 = vmatprep.mubr.msk.f32.mxu1 %vm39_vm0, %v1844_v2  ;;  %v1787_v2 = vmov 1.0  }
 0x16d   :  { %1640 = vmatprep.subr.msk.mxu1 %vm52_vm1, %v1860_v7 }
 0x16f   :  { %1635 = vmatmul.mubr.msk.f32.vlgmr.msra.gmra.mrb[2].mxu1 %vm39_vm0, %v1870_v11 }
 0x170   :  { %1641 = vmatpush3.msk.msra.mxu1 %vm52_vm1, %v1860_v7  ;;  %1637 = vmatprep.mubr.msk.f32.mxu1 %vm39_vm0, %v1876_v12 }
 0x171   :  { %1648 = vmatprep.subr.msk.mxu1 %vm52_vm1, %v646_v45 }
 0x173   :  { %1638 = vmatmul.mubr.msk.f32.gmra.mrb[4].mxu1 %vm39_vm0, %v1514_v13 }
 0x174   :  { %1642 = vmatprep.mubr.msk.f32.mxu1 %vm39_vm0, %v27_v15 }
 0x177   :  { %1643 = vmatmul.mubr.msk.f32.vlgmr.msra.gmra.mrb[2].mxu1 %vm39_vm0, %v28_v16 }
 0x178   :  { %1649 = vmatpush3.msk.msra.mxu1 %vm52_vm1, %v646_v45  ;;  %1645 = vmatprep.mubr.msk.f32.mxu1 %vm39_vm0, %v29_v17  ;;  %v1788_v17 = vmov 2   ;;  %v1791_v45 = vmov 4  }
 0x179   :  { %1725 = vset.pattern.permute.xlu1 %v1788_v17  ;;  %1726 = vset.pattern.permute.xlu0 %v1788_v17 }
 0x17b   :  { %1646 = vmatmul.mubr.msk.f32.gmra.mrb[4].mxu1 %vm39_vm0, %v30_v18 }
 0x17c   :  { %1650 = vmatprep.mubr.msk.f32.mxu1 %vm39_vm0, %v1525_v19 }
 0x17f   :  { %1651 = vmatmul.mubr.msk.f32.vlgmr.msra.gmra.mrb[2].mxu1 %vm39_vm0, %v1526_v20 }
 0x180   :  { %1653 = vmatprep.mubr.msk.f32.mxu1 %vm39_vm0, %v1527_v21 }
 0x183   :  { %1654 = vmatmul.mubr.msk.f32.gmra.mrb[4].mxu1 %vm39_vm0, %v1528_v22 }
 0x23e   :  { %v462_v46 = vpop.f32.mrb[0].mxu1 }
 0x23f   :  { %v1631_v47 = vpop.f32.mrb[1].mxu1  ;;  %v463_v6 = vadd.f32 %v462_v46, %v391_v5  ;;  %v1792_v46 = vmov 5  }
 0x240   :  { %v1793_v47 = vmov 6  }
 0x241   :  { %v822_v7 = vrot.slane %v463_v6, %v1969_v3 }
 0x243   :  { %v823_v12 = vsel %vm818_vm5, %v822_v7, 0.0 }
 0x252   :  { %v1652_v48 = vpop.f32.mrb[2].mxu1 }
 0x253   :  { %v739_v49 = vadd.f32 %v1652_v48, %v361_v26  ;;  %v715_v50 = vpop.f32.mrb[3].mxu1  ;;  %v1794_v48 = vmov 7  }
 0x254   :  { %v738_v51 = vadd.f32 %v715_v50, %v356_v25 }
 0x255   :  { %v743_v52 = vmax.f32 %v739_v49, 0.0 }
 0x256   :  { %v742_v53 = vmax.f32 %v738_v51, 0.0  ;;  %v1655_v54 = vpop.f32.mrb[4].mxu1 }
 0x257   :  { %v741_v55 = vadd.f32 %v1655_v54, %v371_v33  ;;  %v725_v56 = vpop.f32.mrb[5].mxu1 }
 0x258   :  { %v1679_v57 = vpack.c.bf16 %v743_v52, %v742_v53  ;;  %v740_v58 = vadd.f32 %v725_v56, %v366_v32 }
 0x259   :  { %v745_v59 = vmax.f32 %v741_v55, 0.0 }
 0x25a   :  { %v744_v60 = vmax.f32 %v740_v58, 0.0  ;;  %1680 = vmatpush3.bf16.msra.mxu0 %v1679_v57 }
 0x25b   :  { %1681 = vmatprep.subr.bf16.mxu0 %v1784_v23 }
 0x25c   :  { %v1682_v61 = vpack.c.bf16 %v745_v59, %v744_v60 }
 0x25e   :  { %1683 = vmatpush3.bf16.msra.mxu0 %v1682_v61 }
 0x25f   :  { %1667 = vmatprep.subr.mxu0 %v1786_v24 }
 0x261   :  { %1665 = vmatmul.mubr.msk.f32.vlgmr.msra.gmra.mrb[4].mxu0 %vm392_vm3, %v381_v44 }
 0x262   :  { %1669 = vmatprep.mubr.msk.f32.mxu0 %vm1785_vm2, %v1786_v24  ;;  %1668 = vmatpush3.msk.msra.mxu0 %vm833_vm4, %v1787_v2 }
 0x334   :  { %v812_v8 = vpop.f32.mrb[4].mxu0 }
 0x335   :  { %v813_v9 = vadd.f32 %v812_v8, %v391_v5  ;;  %v1666_v10 = vpop.f32.mrb[5].mxu0 }
 0x337   :  { %v828_v11 = vrot.slane %v813_v9, %v1969_v3 }
 0x339   :  { %v1980_v13 = vsel %vm824_vm6, %v828_v11, %v823_v12 }
 0x33a   :  { %1670 = vmatmul.mubr.msk.f32.vlgmr.msra.gmra.mrb[6].mxu0 %vm836_vm7, %v1980_v13  ;;  %v916_v14 = vsel %vm915_vm8, %v1980_v13, inf  ;;  %v1466_v15 = vmul.f32 %v1980_v13, %v1980_v13 }
 0x33b   :  { %917 = vmin.xlane.f32.xlu0 %v916_v14 }
 0x33c   :  { %v1467_v16 = vsel %vm915_vm8, %v1466_v15, 0.0 }
 0x33d   :  { %1468 = vadd.xlane.f32.xlu1 %v1467_v16 }
 0x3c8   :  { %v918_v18 = vpop.xlane.xlu0 %917 }
 0x3c9   :  { %v919_v19 = vrot.slane %v918_v18, 4 }
 0x3ca   :  { %v1469_v20 = vpop.xlane.xlu1 %1468 }
 0x3cb   :  { %v920_v21 = vmin.f32 %v918_v18, %v919_v19  ;;  %v1470_v22 = vrot.slane %v1469_v20, 4 }
 0x3cd   :  { %v921_v23 = vrot.slane %v920_v21, 2  ;;  %v1471_v25 = vadd.f32 %v1470_v22, %v1469_v20 }
 0x3cf   :  { %v1472_v26 = vrot.slane %v1471_v25, 2  ;;  %v922_v27 = vmin.f32 %v920_v21, %v921_v23 }
 0x3d1   :  { %v923_v28 = vrot.slane %v922_v27, 1  ;;  %v1473_v29 = vadd.f32 %v1472_v26, %v1471_v25 }
 0x3d3   :  { %v924_v30 = vmin.f32 %v922_v27, %v923_v28  ;;  %v1474_v31 = vrot.slane %v1473_v29, 1 }
 0x3d5   :  { %1700 = vpush %v924_v30  ;;  %v1475_v32 = vadd.f32 %v1474_v31, %v1473_v29 }
 0x3d7   :  { %1702 = vpush %v1475_v32 }
 0x406   :  { %s1701_s3 = spop %1700 }
 0x407   :  { %v926_v33 = vstv %s1701_s3 }
 0x408   :  { %v927_v34 = vsub.f32 %v1980_v13, %v926_v33  ;;  %s1703_s10 = spop %1702 }
 0x409   :  { %s1479_s11 = smul.f32 0.0625, %s1703_s10 }
 0x40a   :  { %v928_v35 = vadd.f32 10.0, %v927_v34 }
 0x40b   :  { %1481 = sst [smem:[#allocation6]] %s1479_s11 }
 0x40c   :  { %1073 = vperm.xlu1 %1725, %v928_v35  }
 0x40d   :  { %v906_v36 = vpop.f32.mrb[6].mxu0 }
 0x40e   :  { %v910_v37 = vsub.f32 %v906_v36, %v1980_v13  ;;  %1054 = vperm.xlu0 %1726, %v906_v36   ;;  %v1671_v38 = vpop.f32.mrb[7].mxu0 }
 0x410   :  { %v911_v39 = vmul.f32 5.0, %v910_v37  ;;  %1728 = vset.pattern.permute.xlu1 %v1789_v40 }
 0x411   :  { %1135 = vperm.xlu1 %1728, %v928_v35  }
 0x412   :  { %v912_v41 = vadd.f32 0.5, %v911_v39  ;;  %1727 = vset.pattern.permute.xlu0 %v1790_v42 }
 0x413   :  { %1012 = vperm.xlu0 %1727, %v928_v35  }
 0x414   :  { %v913_v43 = vmax.f32 %v912_v41, 0.0 }
 0x415   :  { %1116 = vperm.xlu1 %1728, %v906_v36  }
 0x416   :  { %v914_v44 = vmin.f32 %v913_v43, 1.0 }
 0x417   :  { %1735 = vset.pattern.permute.xlu0 %v1791_v45 }
 0x418   :  { %1188 = vperm.xlu0 %1735, %v914_v44  }
 0x419   :  { %1729 = vset.pattern.permute.xlu1 %v1791_v45 }
 0x41a   :  { %1178 = vperm.xlu1 %1729, %v906_v36  }
 0x41c   :  { %1197 = vperm.xlu0 %1735, %v928_v35  }
 0x41e   :  { %1730 = vset.pattern.permute.xlu1 %v1792_v46 }
 0x41f   :  { %1240 = vperm.xlu1 %1730, %v906_v36  }
 0x420   :  { %1740 = vset.pattern.permute.xlu0 %v1793_v47 }
 0x421   :  { %1321 = vperm.xlu0 %1740, %v928_v35  }
 0x423   :  { %1731 = vset.pattern.permute.xlu1 %v1793_v47 }
 0x424   :  { %1302 = vperm.xlu1 %1731, %v906_v36  }
 0x425   :  { %1742 = vset.pattern.permute.xlu0 %v1794_v48 }
 0x428   :  { %1732 = vset.pattern.permute.xlu1 %v1794_v48 }
 0x429   :  { %1364 = vperm.xlu1 %1732, %v906_v36  }
 0x42d   :  { %1733 = vset.pattern.permute.xlu1 %v1788_v17 }
 0x42e   :  { %1064 = vperm.xlu1 %1733, %v914_v44  }
 0x432   :  { %1734 = vset.pattern.permute.xlu1 %v1789_v40 }
 0x433   :  { %1126 = vperm.xlu1 %1734, %v914_v44  }
 0x437   :  { %1736 = vset.pattern.permute.xlu1 %v1792_v46 }
 0x438   :  { %1250 = vperm.xlu1 %1736, %v914_v44  }
 0x43c   :  { %1737 = vset.pattern.permute.xlu1 %v1793_v47 }
 0x43d   :  { %1312 = vperm.xlu1 %1737, %v914_v44  }
 0x441   :  { %1738 = vset.pattern.permute.xlu1 %v1794_v48 }
 0x442   :  { %1374 = vperm.xlu1 %1738, %v914_v44  }
 0x446   :  { %1739 = vset.pattern.permute.xlu1 %v1792_v46 }
 0x447   :  { %1259 = vperm.xlu1 %1739, %v928_v35  }
 0x44b   :  { %1741 = vset.pattern.permute.xlu1 %v1794_v48 }
 0x44c   :  { %1383 = vperm.xlu1 %1741, %v928_v35  }
 0x44d   :  { %1754 = shalt.err (!%p1751_p2)
}
 0x44e   :  { %s1795_s17 = smov [#allocation6]   ;;  %vm1124_vm9 = vcmp.le.s32.totalorder %v1964_v0, 1  ;;  %vm1062_vm10 = vcmp.le.s32.totalorder %v1964_v0, 0  ;;  %v1796_v36 = vmov 1966171168   ;;  %vm1071_vm11 = vcmp.lt.s32.totalorder %v1964_v0, 2 }
 0x44f   :  { %1501 = dma.smem_to_hbm %s1795_s17, 16, %s2126_s6, [#allocation5]   ;;  %v959_v37 = vunpack.c.l.s4 %v1796_v36  ;;  %vm1133_vm12 = vcmp.lt.s32.totalorder %v1964_v0, 3  ;;  %vm1186_vm13 = vcmp.le.s32.totalorder %v1964_v0, 2  ;;  %vm1010_vm14 = vcmp.lt.s32.totalorder %v1964_v0, 1 }
 0x450   :  { %vm1248_vm15 = vcmp.le.s32.totalorder %v1964_v0, 3  ;;  %vm1195_vm0 = vcmp.lt.s32.totalorder %v1964_v0, 4  ;;  %vm1310_vm1 = vcmp.le.s32.totalorder %v1964_v0, 4  ;;  %vm1257_vm2 = vcmp.lt.s32.totalorder %v1964_v0, 5  ;;  %s1797_s6 = smov [#allocation3]  }
 0x451   :  { %v960_v47 = vunpack.c.0.s8 %v959_v37  ;;  %vm1372_vm3 = vcmp.le.s32.totalorder %v1964_v0, 5  ;;  %vm1319_vm4 = vcmp.lt.s32.totalorder %v1964_v0, 6  ;;  %vm1381_vm8 = vcmp.lt.s32.totalorder %v1964_v0, 7  ;;  %s1487_s20 = sshll.u32 %s1797_s6, 4  ;;  %s1488_s20 = int_to_ptr.vmem [resolvable:$true] %s1487_s20 }
 0x452   :  { %s1755_s21 = scalar_lea.vmem %s1488_s20, 256  ;;  %p1760_p4 = scmp.lt.s32.totalorder %s1488_s20, %s1488_s20 }
 0x453   :  { %p1756_p3 = scmp.ne.s32.totalorder %s1488_s20, %s1755_s21  ;;  %p1761_p5 = scmp.lt.s32.totalorder %s1755_s21, %s1755_s21 }
 0x455   :  { %p1762_p6 = por %p1761_p5, %p1760_p4 }
 0x457   :  { %p1763_p7 = pnand %p1762_p6, %p1756_p3 }
 0x48b   :  { %v1074_v49 = vpop.permute.xlu1 %1073 }
 0x48c   :  { %v1076_v44 = vsel %vm1071_vm11, %v1074_v49, 0.0  ;;  %vm1141_vm11 = vcmp.eq.s32.totalorder %v1962_v63, 3 }
 0x48d   :  { %v1055_v53 = vpop.permute.xlu0 %1054 }
 0x48e   :  { %v1057_v55 = vsub.f32 %v1055_v53, %v1980_v13 }
 0x490   :  { %v2001_v50 = vpop.permute.xlu1 %1135  ;;  %v1058_v59 = vmul.f32 5.0, %v1057_v55 }
 0x492   :  { %v1059_v2 = vadd.f32 0.5, %v1058_v59  ;;  %v1013_v15 = vpop.permute.xlu0 %1012 }
 0x494   :  { %v1117_v51 = vpop.permute.xlu1 %1116  ;;  %v1060_v8 = vmax.f32 %v1059_v2, 0.0 }
 0x495   :  { %v1119_v56 = vsub.f32 %v1117_v51, %v1980_v13  ;;  %v1138_v51 = vsel %vm1133_vm12, %v2001_v50, 0.0  ;;  %vm1203_vm12 = vcmp.eq.s32.totalorder %v1962_v63, 4 }
 0x496   :  { %v1061_v17 = vmin.f32 %v1060_v8, 1.0 }
 0x497   :  { %v1120_v60 = vmul.f32 5.0, %v1119_v56  ;;  %v1189_v28 = vpop.permute.xlu0 %1188 }
 0x499   :  { %v1179_v52 = vpop.permute.xlu1 %1178  ;;  %v1121_v4 = vadd.f32 0.5, %v1120_v60 }
 0x49a   :  { %v1181_v57 = vsub.f32 %v1179_v52, %v1980_v13 }
 0x49b   :  { %v1122_v9 = vmax.f32 %v1121_v4, 0.0 }
 0x49c   :  { %v1182_v61 = vmul.f32 5.0, %v1181_v57  ;;  %v1015_v57 = vsel %vm1010_vm14, %v1013_v15, 0.0 }
 0x49d   :  { %v1123_v18 = vmin.f32 %v1122_v9, 1.0 }
 0x49e   :  { %v1241_v54 = vpop.permute.xlu1 %1240  ;;  %v1183_v5 = vadd.f32 0.5, %v1182_v61 }
 0x49f   :  { %v1243_v62 = vsub.f32 %v1241_v54, %v1980_v13  ;;  %v1198_v54 = vpop.permute.xlu0 %1197 }
 0x4a0   :  { %v1184_v11 = vmax.f32 %v1183_v5, 0.0 }
 0x4a1   :  { %v1244_v6 = vmul.f32 5.0, %v1243_v62  ;;  %v2020_v62 = vsub.s32 %v960_v47, %v1962_v63 }
 0x4a2   :  { %v1185_v19 = vmin.f32 %v1184_v11, 1.0 }
 0x4a3   :  { %v1303_v58 = vpop.permute.xlu1 %1302  ;;  %v1245_v12 = vadd.f32 0.5, %v1244_v6  ;;  %v964_v11 = vrot.slane %v1786_v24, %v2020_v62 }
 0x4a4   :  { %v1305_v7 = vsub.f32 %v1303_v58, %v1980_v13  ;;  %v1191_v29 = vmul.f32 %v1189_v28, %v1185_v19  ;;  %v1025_v19 = vrot.slane %v1015_v57, %v2020_v62 }
 0x4a5   :  { %v1246_v21 = vmax.f32 %v1245_v12, 0.0  ;;  %v972_v28 = vrot.slane %v964_v11, %v2020_v62 }
 0x4a6   :  { %v1306_v14 = vmul.f32 5.0, %v1305_v7  ;;  %v1192_v38 = vsub.f32 1.0, %v1191_v29  ;;  %v1322_v7 = vpop.permute.xlu0 %1321  ;;  %v1026_v29 = vcombine.high %v1025_v19, %v1025_v19 }
 0x4a7   :  { %v1247_v32 = vmin.f32 %v1246_v21, 1.0 }
 0x4a8   :  { %v1365_v1 = vpop.permute.xlu1 %1364  ;;  %v1307_v22 = vadd.f32 0.5, %v1306_v14  ;;  %v1193_v53 = vsel %vm1186_vm13, %v1192_v38, 1.0  ;;  %v1040_v38 = vrot.slane %v1026_v29, %v2020_v62  ;;  %vm1389_vm13 = vcmp.eq.s32.totalorder %v1962_v63, 7 }
 0x4a9   :  { %v1367_v16 = vsub.f32 %v1365_v1, %v1980_v13  ;;  %v1200_v1 = vsel %vm1195_vm0, %v1198_v54, 0.0 }
 0x4aa   :  { %v1308_v30 = vmax.f32 %v1307_v22, 0.0  ;;  %v965_v22 = vcombine.high %v964_v11, %v964_v11 }
 0x4ab   :  { %v1368_v26 = vmul.f32 5.0, %v1367_v16  ;;  %v1324_v16 = vsel %vm1319_vm4, %v1322_v7, 0.0 }
 0x4ac   :  { %v1309_v40 = vmin.f32 %v1308_v30, 1.0  ;;  %v979_v0 = vrot.slane %v965_v22, %v2020_v62 }
 0x4ad   :  { %v1065_v10 = vpop.permute.xlu1 %1064  ;;  %v1369_v34 = vadd.f32 0.5, %v1368_v26 }
 0x4ae   :  { %v1067_v23 = vmul.f32 %v1065_v10, %v1061_v17 }
 0x4af   :  { %v1370_v41 = vmax.f32 %v1369_v34, 0.0 }
 0x4b0   :  { %v1068_v31 = vsub.f32 1.0, %v1067_v23 }
 0x4b1   :  { %v1371_v56 = vmin.f32 %v1370_v41, 1.0 }
 0x4b2   :  { %v1127_v20 = vpop.permute.xlu1 %1126  ;;  %v1069_v39 = vsel %vm1062_vm10, %v1068_v31, 1.0  ;;  %vm1079_vm10 = vcmp.eq.s32.totalorder %v1962_v63, 2 }
 0x4b3   :  { %v1129_v25 = vmul.f32 %v1127_v20, %v1123_v18  ;;  %v1077_v48 = vmul.f32 %v1076_v44, %v1069_v39 }
 0x4b5   :  { %v1130_v27 = vsub.f32 1.0, %v1129_v25  ;;  %v1078_v60 = vadd.f32 %v1077_v48, %v1015_v57  ;;  %v1087_v23 = vrot.slane %v1077_v48, %v2020_v62 }
 0x4b7   :  { %v1251_v33 = vpop.permute.xlu1 %1250  ;;  %v1131_v13 = vsel %vm1124_vm9, %v1130_v27, 1.0  ;;  %v1088_v31 = vcombine.high %v1087_v23, %v1087_v23  ;;  %v1095_v36 = vrot.slane %v1087_v23, %v2020_v62 }
 0x4b8   :  { %v1253_v35 = vmul.f32 %v1251_v33, %v1247_v32  ;;  %v1132_v42 = vmul.f32 %v1131_v13, %v1069_v39  ;;  %v1033_v33 = vrot.slane %v1025_v19, %v2020_v62 }
 0x4b9   :  { %v1102_v41 = vrot.slane %v1088_v31, %v2020_v62  ;;  %v1106_v48 = vrot.slane %v1095_v36, %v1969_v3 }
 0x4ba   :  { %v1254_v45 = vsub.f32 1.0, %v1253_v35  ;;  %v1139_v55 = vmul.f32 %v1138_v51, %v1132_v42  ;;  %v1194_v49 = vmul.f32 %v1193_v53, %v1132_v42  ;;  %v983_v35 = vrot.slane %v972_v28, %v1969_v3 }
 0x4bb   :  { %v1048_v53 = vrot.slane %v1040_v38, %v1969_v3 }
 0x4bc   :  { %v1313_v43 = vpop.permute.xlu1 %1312  ;;  %v1255_v58 = vsel %vm1248_vm15, %v1254_v45, 1.0  ;;  %v1140_v4 = vadd.f32 %v1139_v55, %v1078_v60  ;;  %v1201_v5 = vmul.f32 %v1200_v1, %v1194_v49  ;;  %v1149_v27 = vrot.slane %v1139_v55, %v2020_v62 }
 0x4bd   :  { %v1315_v46 = vmul.f32 %v1313_v43, %v1309_v40  ;;  %v1256_v6 = vmul.f32 %v1255_v58, %v1194_v49  ;;  %v987_v40 = vrot.slane %v979_v0, %v1969_v3  ;;  %v1044_v43 = vrot.slane %v1033_v33, %v1969_v3 }
 0x4be   :  { %v1202_v14 = vadd.f32 %v1201_v5, %v1140_v4  ;;  %v1211_v32 = vrot.slane %v1201_v5, %v2020_v62  ;;  %v1150_v34 = vcombine.high %v1149_v27, %v1149_v27  ;;  %v1157_v39 = vrot.slane %v1149_v27, %v2020_v62 }
 0x4bf   :  { %v1316_v52 = vsub.f32 1.0, %v1315_v46  ;;  %v990_v47 = vsel %vm818_vm5, %v983_v35, 0.0  ;;  %v1110_v49 = vrot.slane %v1102_v41, %v1969_v3 }
 0x4c0   :  { %v1212_v42 = vcombine.high %v1211_v32, %v1211_v32  ;;  %v1164_v44 = vrot.slane %v1150_v34, %v2020_v62  ;;  %v1219_v51 = vrot.slane %v1211_v32, %v2020_v62  ;;  %v1168_v54 = vrot.slane %v1157_v39, %v1969_v3 }
 0x4c1   :  { %v1375_v59 = vpop.permute.xlu1 %1374  ;;  %v1317_v50 = vsel %vm1310_vm1, %v1316_v52, 1.0  ;;  %v1051_v58 = vsel %vm824_vm6, %v1044_v43, %v990_v47 }
 0x4c2   :  { %v1377_v61 = vmul.f32 %v1375_v59, %v1371_v56  ;;  %v1318_v9 = vmul.f32 %v1317_v50, %v1256_v6  ;;  %v991_v56 = vsel %vm818_vm5, %v987_v40, 0.0  ;;  %v1226_v57 = vrot.slane %v1212_v42, %v2020_v62 }
 0x4c3   :  { %v1172_v59 = vrot.slane %v1164_v44, %v1969_v3  ;;  %v1113_v1 = vsel %vm1079_vm10, %v1106_v48, %v1051_v58  ;;  %v1230_v50 = vrot.slane %v1219_v51, %v1969_v3  ;;  %v1052_v4 = vsel %vm824_vm6, %v1048_v53, %v991_v56 }
 0x4c4   :  { %v1378_v2 = vsub.f32 1.0, %v1377_v61  ;;  %v1325_v18 = vmul.f32 %v1324_v16, %v1318_v9  ;;  %v1175_v5 = vsel %vm1141_vm11, %v1168_v54, %v1113_v1  ;;  %vm1265_vm5 = vcmp.eq.s32.totalorder %v1962_v63, 5 }
 0x4c5   :  { %v1237_v16 = vsel %vm1203_vm12, %v1230_v50, %v1175_v5  ;;  %vm1327_vm6 = vcmp.eq.s32.totalorder %v1962_v63, 6 }
 0x4c6   :  { %v1260_v8 = vpop.permute.xlu1 %1259  ;;  %v1379_v12 = vsel %vm1372_vm3, %v1378_v2, 1.0  ;;  %v1335_v52 = vrot.slane %v1325_v18, %v2020_v62 }
 0x4c7   :  { %v1262_v10 = vsel %vm1257_vm2, %v1260_v8, 0.0  ;;  %v1380_v20 = vmul.f32 %v1379_v12, %v1318_v9  ;;  %v1114_v8 = vsel %vm1079_vm10, %v1110_v49, %v1052_v4  ;;  %v1234_v9 = vrot.slane %v1226_v57, %v1969_v3 }
 0x4c8   :  { %v1263_v15 = vmul.f32 %v1262_v10, %v1256_v6  ;;  %v1336_v2 = vcombine.high %v1335_v52, %v1335_v52  ;;  %v1343_v10 = vrot.slane %v1335_v52, %v2020_v62 }
 0x4ca   :  { %v1264_v17 = vadd.f32 %v1263_v15, %v1202_v14  ;;  %v1273_v13 = vrot.slane %v1263_v15, %v2020_v62  ;;  %v1176_v15 = vsel %vm1141_vm11, %v1172_v59, %v1114_v8 }
 0x4cb   :  { %v1384_v21 = vpop.permute.xlu1 %1383  ;;  %v1238_v22 = vsel %vm1203_vm12, %v1234_v9, %v1176_v15 }
 0x4cc   :  { %v1326_v25 = vadd.f32 %v1325_v18, %v1264_v17  ;;  %v1386_v26 = vsel %vm1381_vm8, %v1384_v21, 0.0  ;;  %v1274_v45 = vcombine.high %v1273_v13, %v1273_v13  ;;  %v1281_v55 = vrot.slane %v1273_v13, %v2020_v62 }
 0x4cd   :  { %v1387_v24 = vmul.f32 %v1386_v26, %v1380_v20  ;;  %v1350_v17 = vrot.slane %v1336_v2, %v2020_v62  ;;  %v1354_v21 = vrot.slane %v1343_v10, %v1969_v3 }
 0x4ce   :  { %v1288_v60 = vrot.slane %v1274_v45, %v2020_v62  ;;  %v1292_v6 = vrot.slane %v1281_v55, %v1969_v3 }
 0x4cf   :  { %v1388_v30 = vadd.f32 %v1387_v24, %v1326_v25  ;;  %v1397_v46 = vrot.slane %v1387_v24, %v2020_v62  ;;  %v1358_v24 = vrot.slane %v1350_v17, %v1969_v3 }
 0x4d0   :  { %v1296_v12 = vrot.slane %v1288_v60, %v1969_v3  ;;  %v1299_v19 = vsel %vm1265_vm5, %v1292_v6, %v1237_v16 }
 0x4d1   :  { %vm1425_vm9 = vcmp.gt.f32.partialorder %v1388_v30, 0.0  ;;  %v1398_v61 = vcombine.high %v1397_v46, %v1397_v46  ;;  %v1405_v7 = vrot.slane %v1397_v46, %v2020_v62  ;;  %v1361_v28 = vsel %vm1327_vm6, %v1354_v21, %v1299_v19 }
 0x4d2   :  { %v1426_v37 = vsel %vm1425_vm9, %v1388_v30, 1.0  ;;  %v1300_v27 = vsel %vm1265_vm5, %v1296_v12, %v1238_v22 }
 0x4d3   :  { %1743 = vrcp.f32 %v1426_v37  ;;  %v1412_v14 = vrot.slane %v1398_v61, %v2020_v62  ;;  %v1416_v20 = vrot.slane %v1405_v7, %v1969_v3  ;;  %v1362_v31 = vsel %vm1327_vm6, %v1358_v24, %v1300_v27 }
 0x4d5   :  { %v1420_v26 = vrot.slane %v1412_v14, %v1969_v3  ;;  %v1423_v0 = vsel %vm1389_vm13, %v1416_v20, %v1361_v28 }
 0x4d7   :  { %v1424_v34 = vsel %vm1389_vm13, %v1420_v26, %v1362_v31 }
 0x4dd   :  { %v1744_v11 = vpop.eup %1743 }
 0x4de   :  { %v1436_v18 = vrot.slane %v1744_v11, %v2020_v62 }
 0x4e0   :  { %v1437_v23 = vcombine.high %v1436_v18, %v1436_v18  ;;  %v1444_v25 = vrot.slane %v1436_v18, %v2020_v62 }
 0x4e2   :  { %v1451_v29 = vrot.slane %v1437_v23, %v2020_v62  ;;  %v1455_v30 = vrot.slane %v1444_v25, %v1969_v3 }
 0x4e4   :  { %v1459_v32 = vrot.slane %v1451_v29, %v1969_v3  ;;  %v1462_v33 = vmul.f32 %v1455_v30, %v1423_v0 }
 0x4e6   :  { %v1463_v13 = vmul.f32 %v1459_v32, %v1424_v34  ;;  %1464 = vst.msk [vmem:[#allocation3] sm:$0xff] %vm836_vm7, %v1462_v33 }
 0x4e8   :  { %1465 = vst.msk [vmem:[#allocation3 + $0x8] sm:$0xff] %vm836_vm7, %v1463_v13 }
 0x4e9   :  { %1766 = shalt.err (!%p1763_p7)
}
 0x4ea   :  { %s1767_s24 = scalar_lea.hbm %s2125_s5, 256 }
 0x4eb   :  { %p1768_p8 = scmp.ne.s32.totalorder %s2125_s5, %s1767_s24  ;;  %p1771_p9 = scmp.lt.u32.totalorder %s1767_s24, %s2125_s5 }
 0x4ed   :  { %p1773_p10 = pnand %p1771_p9, %p1768_p8 }
 0x4ef   :  { %1776 = shalt.err (!%p1773_p10)
}
 0x4f0   :  { %s1798_s4 = smov 128   ;;  %s1799_s29 = smov 8  }
 0x4f1   :  { %1493 = dma.vmem_to_hbm [thread:$0]  %s1488_s20, 256, %s2125_s5, [#allocation4], %s1798_s4, %s1798_s4, %s1799_s29  }
 0x4f2   :  { %1777 = dma.done.wait [#allocation4], 256  }
 0x4f3   :  { %1778 = vsyncadd [#allocation4], 4294967040 }
 0x4f4   :  { %1779 = dma.done.wait [#allocation5], 16  }
 0x4f5   :  { %1780 = vsyncadd [#allocation5], 4294967280 }
 0x4f6   :  { %1508 = sfence }
 0x4f7   :  { %1509 = vsyncpa [#allocation4], 1 }
 0x4f8   :  { %1510 = vsyncpa [#allocation5], 1 }

</bundles_post_ra>
